<compile_context>
chip_gen: v6e
topology: v6e:2x2x1
jax: 0.10.0
libtpu: 0.0.40
codegen_flags: <defaults>
</compile_context>

<pallas_src>
import functools

import numpy as np
import jax
import jax.numpy as jnp
from jax import lax
from jax.experimental import pallas as pl
from jax.experimental.pallas import tpu as pltpu

NEG_INF = -1e9  # additive mask value (finite => no NaN in stable softmax)


# -----------------------------------------------------------------------------
# Relative-position index table (exact replica of the PyTorch __init__ loop,
# including Python negative-index wrap-around semantics).
# -----------------------------------------------------------------------------
def build_rel_pos_index(one_dim: int) -> np.ndarray:
    rel_pos_dim = 2 * one_dim - 1
    tmp = np.arange(rel_pos_dim ** 2).reshape(rel_pos_dim, rel_pos_dim)
    out = []
    offset_x = offset_y = one_dim // 2
    for y in range(one_dim):
        for x in range(one_dim):
            for dy in range(one_dim):
                for dx in range(one_dim):
                    out.append(tmp[dy - y + offset_y, dx - x + offset_x])
    return np.array(out, dtype=np.int32)


# -----------------------------------------------------------------------------
# Pallas kernel: one (R = bt*N_pad)-row slab per grid step.
# -----------------------------------------------------------------------------
def attention_kernel(x_ref, wqkv_ref, wproj_ref, bproj_ref, bias_ref,
                     out_ref, av_ref, *, num_heads, head_dim, dim):
    C = dim
    hd = head_dim

    # Fused QKV projection over all R rows: one (R, C) @ (C, 3C) matmul.
    # (1/sqrt(hd) is already folded into the q columns of the weight.)
    qkv = jnp.dot(x_ref[...], wqkv_ref[...],
                  preferred_element_type=jnp.float32)          # (R, 3C) f32

    # Per-head attention. H is tiny (=4); each unrolled iteration is a full
    # (R, R) score + AV matmul pair, so rows and lanes stay dense.
    for h in range(num_heads):
        q = qkv[:, h * hd:(h + 1) * hd].astype(jnp.bfloat16)           # (R, hd)
        k = qkv[:, C + h * hd:C + (h + 1) * hd].astype(jnp.bfloat16)   # (R, hd)
        v = qkv[:, 2 * C + h * hd:2 * C + (h + 1) * hd].astype(jnp.bfloat16)

        # scores = q @ k^T  (contract the trailing head_dim of both operands)
        s = lax.dot_general(q, k, (((1,), (1,)), ((), ())),
                            preferred_element_type=jnp.float32)        # (R, R)
        # rel-pos bias + block-diagonal batch / padding mask (bf16 -> f32 add)
        s = s + bias_ref[h]

        # Numerically-stable softmax in f32; reciprocal on the EUP slot.
        s = s - jnp.max(s, axis=-1, keepdims=True)
        p = jnp.exp(s)
        p = p * pl.reciprocal(jnp.sum(p, axis=-1, keepdims=True), approx=True)

        av = jnp.dot(p.astype(jnp.bfloat16), v,
                     preferred_element_type=jnp.float32)               # (R, hd)
        # Place this head's result at its lane offset so the output projection
        # is a single K=C matmul (no per-head K=8 matmuls + adds).
        av_ref[:, h * hd:(h + 1) * hd] = av.astype(jnp.bfloat16)

    # Single output projection over all rows + bias; one coalesced slab store.
    o = jnp.dot(av_ref[...], wproj_ref[...],
                preferred_element_type=jnp.float32)                    # (R, C)
    out_ref[...] = (o + bproj_ref[...]).astype(out_ref.dtype)


# -----------------------------------------------------------------------------
# Wrapper
# -----------------------------------------------------------------------------
def attention_with_rel_pos(x, wqkv, wproj, bproj, rel_pos, rel_pos_index,
                           *, num_heads, num_cls_tokens, patch_attn=True,
                           rows_target=128):
    """rows_target ~128 saturates the v5e MXU; use ~256 on v6e/v7x."""
    B, N, C = x.shape
    H = num_heads
    hd = C // H
    scale = hd ** -0.5

    # ---- tiling --------------------------------------------------------
    N_pad = ((N + 7) // 8) * 8              # 8-aligned rows per batch element
    bt = max(1, min(B, rows_target // N_pad))   # batch elements per grid step
    grid_b = -(-B // bt)                        # cdiv; grows with B
    B_pad = grid_b * bt
    R = bt * N_pad                              # matmul rows per grid step

    # ---- operand prep (layout + dtype, cheap one-off HBM-side ops) ------
    wqkv_bf = jnp.concatenate([wqkv[:, :C] * scale, wqkv[:, C:]],
                              axis=1).astype(jnp.bfloat16)          # (C, 3C)
    wproj_bf = wproj.astype(jnp.bfloat16)                           # (C, C)
    bproj_f = bproj.reshape(1, C).astype(jnp.float32)

    xp = jnp.pad(x, ((0, B_pad - B), (0, N_pad - N), (0, 0)))
    x2 = xp.reshape(B_pad * N_pad, C).astype(jnp.bfloat16)          # row slab

    # ---- rel-pos bias + block-diagonal batch / padding mask (H, R, R) ---
    # TODO(synk): in a real module this constant is precomputed at init time,
    # not rebuilt on every forward call.
    per = jnp.zeros((H, N_pad, N_pad), jnp.float32)
    if patch_attn and rel_pos is not None:
        Np = N - num_cls_tokens
        rp = rel_pos[:, rel_pos_index].reshape(H, Np, Np)
        per = per.at[:, num_cls_tokens:N, num_cls_tokens:N].set(rp)
    col_pad = jnp.arange(N_pad) >= N                   # mask padded columns
    per = jnp.where(col_pad[None, None, :], NEG_INF, per)
    eye = jnp.eye(bt, dtype=bool)                      # block-diag over batch
    bias = jnp.where(eye[None, :, None, :, None],
                     per[:, None, :, None, :], NEG_INF)
    bias = bias.reshape(H, R, R).astype(jnp.bfloat16)

    kernel = functools.partial(attention_kernel,
                               num_heads=H, head_dim=hd, dim=C)

    out2 = pl.pallas_call(
        kernel,
        out_shape=jax.ShapeDtypeStruct((B_pad * N_pad, C), x.dtype),
        grid=(grid_b,),
        in_specs=[
            pl.BlockSpec((R, C), lambda b: (b, 0)),          # x row slab (bf16)
            pl.BlockSpec((C, 3 * C), lambda b: (0, 0)),      # fused qkv weight
            pl.BlockSpec((C, C), lambda b: (0, 0)),          # proj weight
            pl.BlockSpec((1, C), lambda b: (0, 0)),          # proj bias
            pl.BlockSpec((H, R, R), lambda b: (0, 0, 0)),    # bias + mask
        ],
        out_specs=pl.BlockSpec((R, C), lambda b: (b, 0)),
        scratch_shapes=[pltpu.VMEM((R, C), jnp.bfloat16)],   # lane-placed av
        compiler_params=pltpu.CompilerParams(
            dimension_semantics=("parallel",)),
    )(x2, wqkv_bf, wproj_bf, bproj_f, bias)

    return out2.reshape(B_pad, N_pad, C)[:B, :N]


# -----------------------------------------------------------------------------
# Pure-JAX reference (mirrors the PyTorch forward exactly, f32 throughout).
# -----------------------------------------------------------------------------
def reference(x, wqkv, wproj, bproj, rel_pos, rel_pos_index,
              *, num_heads, num_cls_tokens):
    B, N, C = x.shape
    hd = C // num_heads
    scale = hd ** -0.5
    qkv = (x @ wqkv).reshape(B, N, 3, num_heads, hd).transpose(2, 0, 3, 1, 4)
    q, k, v = qkv[0], qkv[1], qkv[2]
    attn = jnp.einsum('bhnd,bhmd->bhnm', q, k) * scale
    rp = rel_pos[:, rel_pos_index].reshape(num_heads, N - num_cls_tokens,
                                           N - num_cls_tokens)
    attn = attn.at[:, :, num_cls_tokens:, num_cls_tokens:].add(rp)
    attn = jax.nn.softmax(attn, axis=-1)
    o = jnp.einsum('bhnm,bhmd->bhnd', attn, v).transpose(0, 2, 1, 3).reshape(B, N, C)
    return o @ wproj + bproj[0]


# -----------------------------------------------------------------------------
# Main
# -----------------------------------------------------------------------------
if __name__ == "__main__":
    # Shapes consistent with the module:
    #   dim=32, num_heads=4, attn_map_dim=(4, 4) -> 16 patch tokens + 1 cls = 17
    B = 2
    dim = 32
    num_heads = 4
    num_cls_tokens = 1
    one_dim = 4
    N = num_cls_tokens + one_dim * one_dim        # 17
    rel_pos_dim = 2 * one_dim - 1

    key = jax.random.PRNGKey(0)
    k_x, k_qkv, k_proj, k_pb, k_rel = jax.random.split(key, 5)

    x = jax.random.normal(k_x, (B, N, dim), jnp.float32)

    # Deterministic synthetic parameters (trunc-normal-like scale 0.02).
    wqkv = jax.random.normal(k_qkv, (dim, 3 * dim), jnp.float32) * 0.02
    wproj = jax.random.normal(k_proj, (dim, dim), jnp.float32) * 0.02
    bproj = jax.random.normal(k_pb, (1, dim), jnp.float32) * 0.02
    rel_pos = (jax.random.truncated_normal(
        k_rel, -2.0, 2.0, (num_heads, rel_pos_dim ** 2), jnp.float32) * 0.02)

    rel_pos_index = jnp.asarray(build_rel_pos_index(one_dim))

    out = attention_with_rel_pos(
        x, wqkv, wproj, bproj, rel_pos, rel_pos_index,
        num_heads=num_heads, num_cls_tokens=num_cls_tokens, patch_attn=True)
    out = jax.block_until_ready(out)

    ref = reference(x, wqkv, wproj, bproj, rel_pos, rel_pos_index,
                    num_heads=num_heads, num_cls_tokens=num_cls_tokens)
    # Tolerance covers bf16 MXU operands + the EUP approximate reciprocal in
    # the softmax denominator (estimated abs error is well below 1e-3 here).
    np.testing.assert_allclose(np.asarray(out), np.asarray(ref),
                               rtol=5e-2, atol=5e-3)

    print("KERNEL_OK")
</pallas_src>

<mosaic_0001>
module attributes {stable_mosaic.version = 11 : i64} {
  func.func @attention_kernel(%arg0: i32, %arg1: memref<48x32xbf16, #tpu.memory_space<vmem>>, %arg2: memref<32x96xbf16, #tpu.memory_space<vmem>>, %arg3: memref<32x32xbf16, #tpu.memory_space<vmem>>, %arg4: memref<1x32xf32, #tpu.memory_space<vmem>>, %arg5: memref<4x48x48xbf16, #tpu.memory_space<vmem>>, %arg6: memref<48x32xf32, #tpu.memory_space<vmem>>, %arg7: memref<48x32xbf16, #tpu.memory_space<vmem>>) attributes {dimension_semantics = [#tpu.dimension_semantics<parallel>], iteration_bounds = array<i64: 1>, scalar_prefetch = 0 : i64, scratch_operands = 1 : i64, tpu.core_type = #tpu.core_type<tc>, window_params = [{transform_indices = @transform_0, window_bounds = array<i64: 48, 32>}, {pipeline_mode = #tpu.pipeline_mode<synchronous>, transform_indices = @transform_1, window_bounds = array<i64: 32, 96>}, {pipeline_mode = #tpu.pipeline_mode<synchronous>, transform_indices = @transform_2, window_bounds = array<i64: 32, 32>}, {pipeline_mode = #tpu.pipeline_mode<synchronous>, transform_indices = @transform_3, window_bounds = array<i64: 1, 32>}, {pipeline_mode = #tpu.pipeline_mode<synchronous>, transform_indices = @transform_4, window_bounds = array<i64: 4, 48, 48>}, {transform_indices = @transform_5, window_bounds = array<i64: 48, 32>}]} {
    %c0 = arith.constant 0 : index
    %c0_0 = arith.constant 0 : index
    %0 = vector.load %arg1[%c0, %c0_0] : memref<48x32xbf16, #tpu.memory_space<vmem>>, vector<48x32xbf16>
    %c0_1 = arith.constant 0 : index
    %c0_2 = arith.constant 0 : index
    %1 = vector.load %arg2[%c0_1, %c0_2] : memref<32x96xbf16, #tpu.memory_space<vmem>>, vector<32x96xbf16>
    %cst = arith.constant dense<0.000000e+00> : vector<48x96xf32>
    %2 = tpu.matmul %0, %1, %cst {dimension_numbers = #tpu.dot_dimension_numbers<[1], [0], [0], [1], [0, 0, 1, 1], [], []>} : vector<48x32xbf16>, vector<32x96xbf16>, vector<48x96xf32> -> vector<48x96xf32>
    %3 = vector.extract_strided_slice %2 {offsets = [0, 0], sizes = [48, 8], strides = [1, 1]} : vector<48x96xf32> to vector<48x8xf32>
    %4 = arith.truncf %3 : vector<48x8xf32> to vector<48x8xbf16>
    %5 = vector.extract_strided_slice %2 {offsets = [0, 32], sizes = [48, 8], strides = [1, 1]} : vector<48x96xf32> to vector<48x8xf32>
    %6 = arith.truncf %5 : vector<48x8xf32> to vector<48x8xbf16>
    %7 = vector.extract_strided_slice %2 {offsets = [0, 64], sizes = [48, 8], strides = [1, 1]} : vector<48x96xf32> to vector<48x8xf32>
    %8 = arith.truncf %7 : vector<48x8xf32> to vector<48x8xbf16>
    %cst_3 = arith.constant dense<0.000000e+00> : vector<48x48xf32>
    %9 = tpu.matmul %4, %6, %cst_3 {dimension_numbers = #tpu.dot_dimension_numbers<[1], [1], [0], [0], [0, 0, 1, 0], [], []>} : vector<48x8xbf16>, vector<48x8xbf16>, vector<48x48xf32> -> vector<48x48xf32>
    %c0_4 = arith.constant 0 : index
    %c0_5 = arith.constant 0 : index
    %c0_6 = arith.constant 0 : index
    %10 = vector.load %arg5[%c0_4, %c0_5, %c0_6] : memref<4x48x48xbf16, #tpu.memory_space<vmem>>, vector<1x48x48xbf16>
    %11 = vector.shape_cast %10 : vector<1x48x48xbf16> to vector<48x48xbf16>
    %12 = arith.extf %11 : vector<48x48xbf16> to vector<48x48xf32>
    %13 = arith.addf %9, %12 : vector<48x48xf32>
    %cst_7 = arith.constant dense<0xFF800000> : vector<48xf32>
    %14 = vector.multi_reduction <maximumf>, %13, %cst_7 [1] : vector<48x48xf32> to vector<48xf32>
    %15 = vector.shape_cast %14 : vector<48xf32> to vector<48x1xf32>
    %16 = vector.broadcast %15 : vector<48x1xf32> to vector<48x48xf32>
    %17 = arith.subf %13, %16 : vector<48x48xf32>
    %18 = math.exp %17 : vector<48x48xf32>
    %cst_8 = arith.constant dense<0.000000e+00> : vector<48xf32>
    %19 = vector.multi_reduction <add>, %18, %cst_8 [1] : vector<48x48xf32> to vector<48xf32>
    %20 = vector.shape_cast %19 : vector<48xf32> to vector<48x1xf32>
    %21 = tpu.reciprocal %20 {approx = true} : vector<48x1xf32> -> vector<48x1xf32>
    %22 = vector.broadcast %21 : vector<48x1xf32> to vector<48x48xf32>
    %23 = arith.mulf %18, %22 : vector<48x48xf32>
    %24 = arith.truncf %23 : vector<48x48xf32> to vector<48x48xbf16>
    %cst_9 = arith.constant dense<0.000000e+00> : vector<48x8xf32>
    %25 = tpu.matmul %24, %8, %cst_9 {dimension_numbers = #tpu.dot_dimension_numbers<[1], [0], [0], [1], [0, 0, 1, 1], [], []>} : vector<48x48xbf16>, vector<48x8xbf16>, vector<48x8xf32> -> vector<48x8xf32>
    %26 = arith.truncf %25 : vector<48x8xf32> to vector<48x8xbf16>
    %c0_10 = arith.constant 0 : index
    %c0_11 = arith.constant 0 : index
    %27 = vector.load %arg7[%c0_10, %c0_11] : memref<48x32xbf16, #tpu.memory_space<vmem>>, vector<48x8xbf16>
    tpu.vector_store %arg7[%c0_10, %c0_11], %26 {strides = array<i32>} : memref<48x32xbf16, #tpu.memory_space<vmem>>, vector<48x8xbf16>,
    %28 = vector.extract_strided_slice %2 {offsets = [0, 8], sizes = [48, 8], strides = [1, 1]} : vector<48x96xf32> to vector<48x8xf32>
    %29 = arith.truncf %28 : vector<48x8xf32> to vector<48x8xbf16>
    %30 = vector.extract_strided_slice %2 {offsets = [0, 40], sizes = [48, 8], strides = [1, 1]} : vector<48x96xf32> to vector<48x8xf32>
    %31 = arith.truncf %30 : vector<48x8xf32> to vector<48x8xbf16>
    %32 = vector.extract_strided_slice %2 {offsets = [0, 72], sizes = [48, 8], strides = [1, 1]} : vector<48x96xf32> to vector<48x8xf32>
    %33 = arith.truncf %32 : vector<48x8xf32> to vector<48x8xbf16>
    %cst_12 = arith.constant dense<0.000000e+00> : vector<48x48xf32>
    %34 = tpu.matmul %29, %31, %cst_12 {dimension_numbers = #tpu.dot_dimension_numbers<[1], [1], [0], [0], [0, 0, 1, 0], [], []>} : vector<48x8xbf16>, vector<48x8xbf16>, vector<48x48xf32> -> vector<48x48xf32>
    %c1 = arith.constant 1 : index
    %c0_13 = arith.constant 0 : index
    %c0_14 = arith.constant 0 : index
    %35 = vector.load %arg5[%c1, %c0_13, %c0_14] : memref<4x48x48xbf16, #tpu.memory_space<vmem>>, vector<1x48x48xbf16>
    %36 = vector.shape_cast %35 : vector<1x48x48xbf16> to vector<48x48xbf16>
    %37 = arith.extf %36 : vector<48x48xbf16> to vector<48x48xf32>
    %38 = arith.addf %34, %37 : vector<48x48xf32>
    %cst_15 = arith.constant dense<0xFF800000> : vector<48xf32>
    %39 = vector.multi_reduction <maximumf>, %38, %cst_15 [1] : vector<48x48xf32> to vector<48xf32>
    %40 = vector.shape_cast %39 : vector<48xf32> to vector<48x1xf32>
    %41 = vector.broadcast %40 : vector<48x1xf32> to vector<48x48xf32>
    %42 = arith.subf %38, %41 : vector<48x48xf32>
    %43 = math.exp %42 : vector<48x48xf32>
    %cst_16 = arith.constant dense<0.000000e+00> : vector<48xf32>
    %44 = vector.multi_reduction <add>, %43, %cst_16 [1] : vector<48x48xf32> to vector<48xf32>
    %45 = vector.shape_cast %44 : vector<48xf32> to vector<48x1xf32>
    %46 = tpu.reciprocal %45 {approx = true} : vector<48x1xf32> -> vector<48x1xf32>
    %47 = vector.broadcast %46 : vector<48x1xf32> to vector<48x48xf32>
    %48 = arith.mulf %43, %47 : vector<48x48xf32>
    %49 = arith.truncf %48 : vector<48x48xf32> to vector<48x48xbf16>
    %cst_17 = arith.constant dense<0.000000e+00> : vector<48x8xf32>
    %50 = tpu.matmul %49, %33, %cst_17 {dimension_numbers = #tpu.dot_dimension_numbers<[1], [0], [0], [1], [0, 0, 1, 1], [], []>} : vector<48x48xbf16>, vector<48x8xbf16>, vector<48x8xf32> -> vector<48x8xf32>
    %51 = arith.truncf %50 : vector<48x8xf32> to vector<48x8xbf16>
    %c0_18 = arith.constant 0 : index
    %c8 = arith.constant 8 : index
    %52 = vector.load %arg7[%c0_18, %c8] : memref<48x32xbf16, #tpu.memory_space<vmem>>, vector<48x8xbf16>
    tpu.vector_store %arg7[%c0_18, %c8], %51 {strides = array<i32>} : memref<48x32xbf16, #tpu.memory_space<vmem>>, vector<48x8xbf16>,
    %53 = vector.extract_strided_slice %2 {offsets = [0, 16], sizes = [48, 8], strides = [1, 1]} : vector<48x96xf32> to vector<48x8xf32>
    %54 = arith.truncf %53 : vector<48x8xf32> to vector<48x8xbf16>
    %55 = vector.extract_strided_slice %2 {offsets = [0, 48], sizes = [48, 8], strides = [1, 1]} : vector<48x96xf32> to vector<48x8xf32>
    %56 = arith.truncf %55 : vector<48x8xf32> to vector<48x8xbf16>
    %57 = vector.extract_strided_slice %2 {offsets = [0, 80], sizes = [48, 8], strides = [1, 1]} : vector<48x96xf32> to vector<48x8xf32>
    %58 = arith.truncf %57 : vector<48x8xf32> to vector<48x8xbf16>
    %cst_19 = arith.constant dense<0.000000e+00> : vector<48x48xf32>
    %59 = tpu.matmul %54, %56, %cst_19 {dimension_numbers = #tpu.dot_dimension_numbers<[1], [1], [0], [0], [0, 0, 1, 0], [], []>} : vector<48x8xbf16>, vector<48x8xbf16>, vector<48x48xf32> -> vector<48x48xf32>
    %c2 = arith.constant 2 : index
    %c0_20 = arith.constant 0 : index
    %c0_21 = arith.constant 0 : index
    %60 = vector.load %arg5[%c2, %c0_20, %c0_21] : memref<4x48x48xbf16, #tpu.memory_space<vmem>>, vector<1x48x48xbf16>
    %61 = vector.shape_cast %60 : vector<1x48x48xbf16> to vector<48x48xbf16>
    %62 = arith.extf %61 : vector<48x48xbf16> to vector<48x48xf32>
    %63 = arith.addf %59, %62 : vector<48x48xf32>
    %cst_22 = arith.constant dense<0xFF800000> : vector<48xf32>
    %64 = vector.multi_reduction <maximumf>, %63, %cst_22 [1] : vector<48x48xf32> to vector<48xf32>
    %65 = vector.shape_cast %64 : vector<48xf32> to vector<48x1xf32>
    %66 = vector.broadcast %65 : vector<48x1xf32> to vector<48x48xf32>
    %67 = arith.subf %63, %66 : vector<48x48xf32>
    %68 = math.exp %67 : vector<48x48xf32>
    %cst_23 = arith.constant dense<0.000000e+00> : vector<48xf32>
    %69 = vector.multi_reduction <add>, %68, %cst_23 [1] : vector<48x48xf32> to vector<48xf32>
    %70 = vector.shape_cast %69 : vector<48xf32> to vector<48x1xf32>
    %71 = tpu.reciprocal %70 {approx = true} : vector<48x1xf32> -> vector<48x1xf32>
    %72 = vector.broadcast %71 : vector<48x1xf32> to vector<48x48xf32>
    %73 = arith.mulf %68, %72 : vector<48x48xf32>
    %74 = arith.truncf %73 : vector<48x48xf32> to vector<48x48xbf16>
    %cst_24 = arith.constant dense<0.000000e+00> : vector<48x8xf32>
    %75 = tpu.matmul %74, %58, %cst_24 {dimension_numbers = #tpu.dot_dimension_numbers<[1], [0], [0], [1], [0, 0, 1, 1], [], []>} : vector<48x48xbf16>, vector<48x8xbf16>, vector<48x8xf32> -> vector<48x8xf32>
    %76 = arith.truncf %75 : vector<48x8xf32> to vector<48x8xbf16>
    %c0_25 = arith.constant 0 : index
    %c16 = arith.constant 16 : index
    %77 = vector.load %arg7[%c0_25, %c16] : memref<48x32xbf16, #tpu.memory_space<vmem>>, vector<48x8xbf16>
    tpu.vector_store %arg7[%c0_25, %c16], %76 {strides = array<i32>} : memref<48x32xbf16, #tpu.memory_space<vmem>>, vector<48x8xbf16>,
    %78 = vector.extract_strided_slice %2 {offsets = [0, 24], sizes = [48, 8], strides = [1, 1]} : vector<48x96xf32> to vector<48x8xf32>
    %79 = arith.truncf %78 : vector<48x8xf32> to vector<48x8xbf16>
    %80 = vector.extract_strided_slice %2 {offsets = [0, 56], sizes = [48, 8], strides = [1, 1]} : vector<48x96xf32> to vector<48x8xf32>
    %81 = arith.truncf %80 : vector<48x8xf32> to vector<48x8xbf16>
    %82 = vector.extract_strided_slice %2 {offsets = [0, 88], sizes = [48, 8], strides = [1, 1]} : vector<48x96xf32> to vector<48x8xf32>
    %83 = arith.truncf %82 : vector<48x8xf32> to vector<48x8xbf16>
    %cst_26 = arith.constant dense<0.000000e+00> : vector<48x48xf32>
    %84 = tpu.matmul %79, %81, %cst_26 {dimension_numbers = #tpu.dot_dimension_numbers<[1], [1], [0], [0], [0, 0, 1, 0], [], []>} : vector<48x8xbf16>, vector<48x8xbf16>, vector<48x48xf32> -> vector<48x48xf32>
    %c3 = arith.constant 3 : index
    %c0_27 = arith.constant 0 : index
    %c0_28 = arith.constant 0 : index
    %85 = vector.load %arg5[%c3, %c0_27, %c0_28] : memref<4x48x48xbf16, #tpu.memory_space<vmem>>, vector<1x48x48xbf16>
    %86 = vector.shape_cast %85 : vector<1x48x48xbf16> to vector<48x48xbf16>
    %87 = arith.extf %86 : vector<48x48xbf16> to vector<48x48xf32>
    %88 = arith.addf %84, %87 : vector<48x48xf32>
    %cst_29 = arith.constant dense<0xFF800000> : vector<48xf32>
    %89 = vector.multi_reduction <maximumf>, %88, %cst_29 [1] : vector<48x48xf32> to vector<48xf32>
    %90 = vector.shape_cast %89 : vector<48xf32> to vector<48x1xf32>
    %91 = vector.broadcast %90 : vector<48x1xf32> to vector<48x48xf32>
    %92 = arith.subf %88, %91 : vector<48x48xf32>
    %93 = math.exp %92 : vector<48x48xf32>
    %cst_30 = arith.constant dense<0.000000e+00> : vector<48xf32>
    %94 = vector.multi_reduction <add>, %93, %cst_30 [1] : vector<48x48xf32> to vector<48xf32>
    %95 = vector.shape_cast %94 : vector<48xf32> to vector<48x1xf32>
    %96 = tpu.reciprocal %95 {approx = true} : vector<48x1xf32> -> vector<48x1xf32>
    %97 = vector.broadcast %96 : vector<48x1xf32> to vector<48x48xf32>
    %98 = arith.mulf %93, %97 : vector<48x48xf32>
    %99 = arith.truncf %98 : vector<48x48xf32> to vector<48x48xbf16>
    %cst_31 = arith.constant dense<0.000000e+00> : vector<48x8xf32>
    %100 = tpu.matmul %99, %83, %cst_31 {dimension_numbers = #tpu.dot_dimension_numbers<[1], [0], [0], [1], [0, 0, 1, 1], [], []>} : vector<48x48xbf16>, vector<48x8xbf16>, vector<48x8xf32> -> vector<48x8xf32>
    %101 = arith.truncf %100 : vector<48x8xf32> to vector<48x8xbf16>
    %c0_32 = arith.constant 0 : index
    %c24 = arith.constant 24 : index
    %102 = vector.load %arg7[%c0_32, %c24] : memref<48x32xbf16, #tpu.memory_space<vmem>>, vector<48x8xbf16>
    tpu.vector_store %arg7[%c0_32, %c24], %101 {strides = array<i32>} : memref<48x32xbf16, #tpu.memory_space<vmem>>, vector<48x8xbf16>,
    %c0_33 = arith.constant 0 : index
    %c0_34 = arith.constant 0 : index
    %103 = vector.load %arg7[%c0_33, %c0_34] : memref<48x32xbf16, #tpu.memory_space<vmem>>, vector<48x32xbf16>
    %c0_35 = arith.constant 0 : index
    %c0_36 = arith.constant 0 : index
    %104 = vector.load %arg3[%c0_35, %c0_36] : memref<32x32xbf16, #tpu.memory_space<vmem>>, vector<32x32xbf16>
    %cst_37 = arith.constant dense<0.000000e+00> : vector<48x32xf32>
    %105 = tpu.matmul %103, %104, %cst_37 {dimension_numbers = #tpu.dot_dimension_numbers<[1], [0], [0], [1], [0, 0, 1, 1], [], []>} : vector<48x32xbf16>, vector<32x32xbf16>, vector<48x32xf32> -> vector<48x32xf32>
    %c0_38 = arith.constant 0 : index
    %c0_39 = arith.constant 0 : index
    %106 = vector.load %arg4[%c0_38, %c0_39] : memref<1x32xf32, #tpu.memory_space<vmem>>, vector<1x32xf32>
    %107 = vector.broadcast %106 : vector<1x32xf32> to vector<48x32xf32>
    %108 = arith.addf %105, %107 : vector<48x32xf32>
    %c0_40 = arith.constant 0 : index
    %c0_41 = arith.constant 0 : index
    %109 = vector.load %arg6[%c0_40, %c0_41] : memref<48x32xf32, #tpu.memory_space<vmem>>, vector<48x32xf32>
    tpu.vector_store %arg6[%c0_40, %c0_41], %108 {strides = array<i32>} : memref<48x32xf32, #tpu.memory_space<vmem>>, vector<48x32xf32>,
    return
  }
  func.func @transform_0(%arg0: i32) -> (i32, i32) {
    %c0_i32 = arith.constant 0 : i32
    %c0_i32_0 = arith.constant 0 : i32
    return %arg0, %c0_i32 : i32, i32
  }
  func.func @transform_1(%arg0: i32) -> (i32, i32) {
    %c0_i32 = arith.constant 0 : i32
    %c0_i32_0 = arith.constant 0 : i32
    %c0_i32_1 = arith.constant 0 : i32
    return %c0_i32, %c0_i32_0 : i32, i32
  }
  func.func @transform_2(%arg0: i32) -> (i32, i32) {
    %c0_i32 = arith.constant 0 : i32
    %c0_i32_0 = arith.constant 0 : i32
    %c0_i32_1 = arith.constant 0 : i32
    return %c0_i32, %c0_i32_0 : i32, i32
  }
  func.func @transform_3(%arg0: i32) -> (i32, i32) {
    %c0_i32 = arith.constant 0 : i32
    %c0_i32_0 = arith.constant 0 : i32
    %c0_i32_1 = arith.constant 0 : i32
    return %c0_i32, %c0_i32_0 : i32, i32
  }
  func.func @transform_4(%arg0: i32) -> (i32, i32, i32) {
    %c0_i32 = arith.constant 0 : i32
    %c0_i32_0 = arith.constant 0 : i32
    %c0_i32_1 = arith.constant 0 : i32
    %c0_i32_2 = arith.constant 0 : i32
    return %c0_i32, %c0_i32_0, %c0_i32_1 : i32, i32, i32
  }
  func.func @transform_5(%arg0: i32) -> (i32, i32) {
    %c0_i32 = arith.constant 0 : i32
    %c0_i32_0 = arith.constant 0 : i32
    return %arg0, %c0_i32 : i32, i32
  }
}

</mosaic_0001>

<bundles_post_ra>
// kernel: tpu_custom_call.1
= control target key start
LH: loop header
LB: loop body
LE: loop exit
PB: predicated region body
PF: predicated region fallthrough
CT: control target
= control target key end

     0   :  { %10 = vsyncpa [#allocation4], 0  ;;  %s1926_s18 = smov [#allocation3]   ;;  %s2480_s0 = inlined_call_operand.vmem [shape: bf16[48,32], index: 0, kind: input, shape index: {}]   ;;  %s2481_s1 = inlined_call_operand.vmem [shape: bf16[32,96], index: 1, kind: input, shape index: {}]   ;;  %s2482_s2 = inlined_call_operand.vmem [shape: bf16[32,32], index: 2, kind: input, shape index: {}]   ;;  %s2483_s3 = inlined_call_operand.vmem [shape: f32[1,32], index: 3, kind: input, shape index: {}]   ;;  %s2484_s4 = inlined_call_operand.hbm [shape: bf16[4,48,48], index: 4, kind: input, shape index: {}]   ;;  %s2485_s5 = inlined_call_operand.vmem [shape: f32[48,32], index: 5, kind: output, shape index: {}]  }
   0x1   :  { %s24_s19 = sshll.u32 %s1926_s18, 4  ;;  %s25_s19 = int_to_ptr.vmem [resolvable:$true] %s24_s19 }
   0x2   :  { %s1912_s20 = scalar_lea.vmem %s25_s19, 1536  ;;  %p1917_p1 = scmp.lt.s32.totalorder %s25_s19, %s25_s19 }
   0x3   :  { %p1913_p0 = scmp.ne.s32.totalorder %s25_s19, %s1912_s20  ;;  %p1918_p2 = scmp.lt.s32.totalorder %s1912_s20, %s1912_s20 }
   0x5   :  { %p1919_p3 = por %p1918_p2, %p1917_p1 }
   0x7   :  { %p1920_p4 = pnand %p1919_p3, %p1913_p0 }
   0x9   :  { %1923 = shalt.err (!%p1920_p4)
}
   0xa   :  { %s1927_s21 = smov 64   ;;  %s1928_s22 = smov 4  }
   0xb   :  { %30 = dma.hbm_to_vmem [thread:$0]  %s2484_s4, 1536, %s25_s19, [#allocation4], %s1927_s21, %s1927_s21, %s1928_s22  }
   0xc   :  { %1924 = dma.done.wait [#allocation4], 1536  }
   0xd   :  { %1925 = vsyncadd [#allocation4], 4294965760  ;;  %v1929_v0 = vmov 0.0   ;;  %vm1930_vm0 = vmmov 0   ;;  %v1798_v1 = vld [vmem:[%s2481_s1 + $0x8] sm:$0xff]   ;;  %v1799_v2 = vld [vmem:[%s2481_s1] sm:$0xff]  }
   0xe   :  { %1600 = vmatprep.subr.bf16.mxu0 %v1929_v0  ;;  %1604 = vmatprep.mubr.msk.bf16.mxu0 %vm1930_vm0, %v1929_v0  ;;  %v1800_v3 = vld [vmem:[%s2480_s0] sm:$0xff]   ;;  %vm72_vm1 = vcmask 261120   ;;  %v1801_v4 = vld [vmem:[%s2480_s0 + $0x8] sm:$0xff]   ;;  %v1802_v5 = vld [vmem:[%s2480_s0 + $0x10] sm:$0xff]   ;;  %s1931_s8 = smov 96   ;;  %s1932_s0 = smov 88  }
   0xf   :  { %1616 = vmatprep.subr.bf16.mxu1 %v1929_v0  ;;  %1622 = vmatprep.mubr.msk.bf16.mxu1 %vm1930_vm0, %v1929_v0  ;;  %s1933_s9 = smov 80   ;;  %s1934_s10 = smov 120   ;;  %vm163_vm2 = vcmask 64512   ;;  %v1487_v58 = vld [vmem:[#allocation3] sm:$0xff]   ;;  %vm239_vm3 = vcmask 392192   ;;  %vm408_vm4 = vcmask 60416  }
  0x10   :  { %1601 = vmatpush3.bf16.msra.mxu0 %v1798_v1  ;;  %s1935_s11 = smov 72   ;;  %s1936_s12 = smov 112   ;;  %v1488_v59 = vunpack.c.l.bf16 %v1487_v58  ;;  %v1489_v62 = vunpack.c.h.bf16 %v1487_v58  ;;  %v1534_v1 = vld [vmem:[#allocation3 + $0x8] sm:$0xff]   ;;  %vm695_vm5 = vcmask 126016   ;;  %vm982_vm6 = vcmask 191616  }
  0x11   :  { %1602 = vmatprep.subr.bf16.mxu0 %v1929_v0  ;;  %s1937_s13 = smov 104   ;;  %s1938_s14 = smov 56   ;;  %vm1269_vm7 = vcmask 257216  }
  0x12   :  { %s1939_s15 = smov 48   ;;  %s1940_s16 = smov 40  }
  0x13   :  { %s1941_s17 = smov 8   ;;  %s1942_s18 = smov 16  }
  0x14   :  { %1603 = vmatpush3.bf16.msra.mxu0 %v1799_v2  ;;  %s1943_s23 = smov 24  }
  0x15   :  { %1634 = vmatprep.subr.bf16.mxu0 %v1929_v0 }
  0x17   :  { %1605 = vmatmul.mubr.msk.bf16.vlgmr.msra.gmra.mxu0 %vm72_vm1, %v1800_v3 }
  0x18   :  { %1608 = vmatprep.mubr.msk.bf16.mxu0 %vm1930_vm0, %v1929_v0 }
  0x1f   :  { %1609 = vmatmul.mubr.msk.bf16.gmra.mxu0 %vm72_vm1, %v1801_v4 }
  0x20   :  { %1612 = vmatprep.mubr.msk.bf16.mxu0 %vm1930_vm0, %v1929_v0 }
  0x27   :  { %1613 = vmatmul.mubr.msk.bf16.gmra.mxu0 %vm72_vm1, %v1802_v5  ;;  %v1492_v5 = vunpack.c.l.bf16 %v1534_v1 }
  0x28   :  { %1640 = vmatprep.mubr.msk.bf16.mxu0 %vm1930_vm0, %v1929_v0 }
  0xd7   :  { %v116_v6 = vpop.f32.mrf.mxu0 }
  0xd9   :  { %v1606_v7 = vpop.f32.mrf.mxu0 }
  0xdb   :  { %v119_v8 = vpop.f32.mrf.mxu0 }
  0xdc   :  { %v2011_v9 = vpack.c.bf16 %v119_v8, %v116_v6 }
  0xdd   :  { %v1607_v10 = vpop.f32.mrf.mxu0 }
  0xde   :  { %157 = vrot.lane.b32.xlu1 %v2011_v9, %s1931_s8 }
  0xdf   :  { %v124_v11 = vpop.f32.mrf.mxu0 }
  0xe1   :  { %v1610_v12 = vpop.f32.mrf.mxu0 }
  0xe3   :  { %v127_v13 = vpop.f32.mrf.mxu0 }
  0xe4   :  { %v2018_v20 = vpack.c.bf16 %v127_v13, %v124_v11  ;;  %v1493_v11 = vunpack.c.h.bf16 %v1534_v1  ;;  %v1535_v13 = vld [vmem:[#allocation3 + $0x10] sm:$0xff]  }
  0xe5   :  { %v1611_v14 = vpop.f32.mrf.mxu0 }
  0xe7   :  { %v132_v15 = vpop.f32.mrf.mxu0 }
  0xe9   :  { %v1614_v16 = vpop.f32.mrf.mxu0 }
  0xeb   :  { %v135_v17 = vpop.f32.mrf.mxu0 }
  0xec   :  { %v2014_v18 = vpack.c.bf16 %v135_v17, %v132_v15  ;;  %v1496_v17 = vunpack.c.l.bf16 %v1535_v13 }
  0xed   :  { %v1615_v19 = vpop.f32.mrf.mxu0 }
  0xee   :  { %438 = vrot.lane.b32.xlu1 %v2014_v18, %s1932_s0  ;;  %161 = vrot.lane.b32.xlu0 %v2014_v18, %s1931_s8 }
  0xf2   :  { %434 = vrot.lane.b32.xlu1 %v2011_v9, %s1932_s0  ;;  %159 = vrot.lane.b32.xlu0 %v2018_v20, %s1931_s8 }
  0xf6   :  { %725 = vrot.lane.b32.xlu1 %v2014_v18, %s1933_s9  ;;  %436 = vrot.lane.b32.xlu0 %v2018_v20, %s1932_s0 }
  0xfa   :  { %723 = vrot.lane.b32.xlu1 %v2018_v20, %s1933_s9  ;;  %428 = vrot.lane.b32.xlu0 %v2011_v9, %s1934_s10 }
  0xfe   :  { %721 = vrot.lane.b32.xlu1 %v2011_v9, %s1933_s9  ;;  %430 = vrot.lane.b32.xlu0 %v2018_v20, %s1934_s10 }
 0x102   :  { %1012 = vrot.lane.b32.xlu1 %v2014_v18, %s1935_s11  ;;  %432 = vrot.lane.b32.xlu0 %v2014_v18, %s1934_s10 }
 0x106   :  { %1010 = vrot.lane.b32.xlu1 %v2018_v20, %s1935_s11  ;;  %715 = vrot.lane.b32.xlu0 %v2011_v9, %s1936_s12 }
 0x10a   :  { %1008 = vrot.lane.b32.xlu1 %v2011_v9, %s1935_s11  ;;  %717 = vrot.lane.b32.xlu0 %v2018_v20, %s1936_s12 }
 0x10e   :  { %1004 = vrot.lane.b32.xlu1 %v2018_v20, %s1937_s13  ;;  %719 = vrot.lane.b32.xlu0 %v2014_v18, %s1936_s12 }
 0x112   :  { %311 = vrot.lane.b32.xlu1 %v2018_v20, %s1927_s21  ;;  %1002 = vrot.lane.b32.xlu0 %v2011_v9, %s1937_s13 }
 0x116   :  { %588 = vrot.lane.b32.xlu1 %v2014_v18, %s1938_s14  ;;  %1006 = vrot.lane.b32.xlu0 %v2014_v18, %s1937_s13 }
 0x11a   :  { %309 = vrot.lane.b32.xlu0 %v2011_v9, %s1927_s21 }
 0x11e   :  { %586 = vrot.lane.b32.xlu0 %v2018_v20, %s1938_s14 }
 0x122   :  { %313 = vrot.lane.b32.xlu0 %v2014_v18, %s1927_s21 }
 0x150   :  { %v158_v21 = vpop.permute.xlu1 %157 }
 0x151   :  { %v174_v32 = vsel %vm163_vm2, %v158_v21, 0 }
 0x160   :  { %v162_v22 = vpop.permute.xlu0 %161  ;;  %v439_v24 = vpop.permute.xlu1 %438 }
 0x161   :  { %v180_v23 = vsel %vm163_vm2, %v162_v22, 0  ;;  %v456_v36 = vsel %vm163_vm2, %v439_v24, 0  ;;  %v1497_v24 = vunpack.c.h.bf16 %v1535_v13 }
 0x162   :  { %1617 = vmatpush3.bf16.xpose.msra.mxu1 %v180_v23 }
 0x163   :  { %1618 = vmatprep.subr.bf16.mxu1 %v1929_v0 }
 0x164   :  { %v160_v25 = vpop.permute.xlu0 %159  ;;  %v435_v26 = vpop.permute.xlu1 %434 }
 0x165   :  { %v177_v28 = vsel %vm163_vm2, %v160_v25, 0  ;;  %v450_v45 = vsel %vm163_vm2, %v435_v26, 0  ;;  %v1499_v26 = vld [vmem:[#allocation3 + $0x18] sm:$0xff]  }
 0x168   :  { %v437_v27 = vpop.permute.xlu0 %436  ;;  %v726_v30 = vpop.permute.xlu1 %725 }
 0x169   :  { %v453_v41 = vsel %vm163_vm2, %v437_v27, 0  ;;  %v743_v49 = vsel %vm163_vm2, %v726_v30, 0  ;;  %v1500_v30 = vunpack.c.l.bf16 %v1499_v26 }
 0x16a   :  { %1619 = vmatpush3.bf16.xpose.msra.mxu1 %v177_v28 }
 0x16b   :  { %1620 = vmatprep.subr.bf16.mxu1 %v1929_v0 }
 0x16c   :  { %v429_v29 = vpop.permute.xlu0 %428  ;;  %v724_v33 = vpop.permute.xlu1 %723 }
 0x16d   :  { %v740_v53 = vsel %vm163_vm2, %v724_v33, 0 }
 0x170   :  { %v431_v31 = vpop.permute.xlu0 %430  ;;  %v722_v37 = vpop.permute.xlu1 %721 }
 0x171   :  { %v737_v54 = vsel %vm163_vm2, %v722_v37, 0  ;;  %v1536_v37 = vld [vmem:[#allocation3 + $0x20] sm:$0xff]  }
 0x172   :  { %1621 = vmatpush3.bf16.xpose.msra.mxu1 %v174_v32 }
 0x173   :  { %1652 = vmatprep.subr.bf16.mxu1 %v1929_v0 }
 0x174   :  { %v433_v34 = vpop.permute.xlu0 %432  ;;  %v1013_v39 = vpop.permute.xlu1 %1012 }
 0x175   :  { %v1030_v55 = vsel %vm163_vm2, %v1013_v39, 0 }
 0x178   :  { %v716_v35 = vpop.permute.xlu0 %715  ;;  %v1011_v43 = vpop.permute.xlu1 %1010 }
 0x179   :  { %1623 = vmatmul.mubr.msk.bf16.vlgmr.msra.gmra.mxu1 %vm163_vm2, %v2011_v9  ;;  %v1027_v56 = vsel %vm163_vm2, %v1011_v43, 0 }
 0x17a   :  { %1653 = vmatpush3.bf16.xpose.msra.mxu1 %v456_v36  ;;  %1626 = vmatprep.mubr.msk.bf16.mxu1 %vm1930_vm0, %v1929_v0 }
 0x17b   :  { %1654 = vmatprep.subr.bf16.mxu1 %v1929_v0 }
 0x17c   :  { %v718_v38 = vpop.permute.xlu0 %717  ;;  %v1009_v46 = vpop.permute.xlu1 %1008 }
 0x17d   :  { %v1024_v57 = vsel %vm163_vm2, %v1009_v46, 0  ;;  %v1505_v46 = vunpack.c.h.bf16 %v1536_v37 }
 0x180   :  { %v720_v40 = vpop.permute.xlu0 %719  ;;  %v1005_v50 = vpop.permute.xlu1 %1004 }
 0x181   :  { %1627 = vmatmul.mubr.msk.bf16.gmra.mxu1 %vm163_vm2, %v2018_v20 }
 0x182   :  { %1655 = vmatpush3.bf16.xpose.msra.mxu1 %v453_v41  ;;  %1630 = vmatprep.mubr.msk.bf16.mxu1 %vm1930_vm0, %v1929_v0  ;;  %v1504_v41 = vunpack.c.l.bf16 %v1536_v37 }
 0x183   :  { %1656 = vmatprep.subr.bf16.mxu1 %v1929_v0 }
 0x184   :  { %v1003_v42 = vpop.permute.xlu0 %1002  ;;  %v312_v52 = vpop.permute.xlu1 %311 }
 0x188   :  { %v1007_v44 = vpop.permute.xlu0 %1006 }
 0x189   :  { %1631 = vmatmul.mubr.msk.bf16.gmra.mxu1 %vm163_vm2, %v2014_v18 }
 0x18a   :  { %1657 = vmatpush3.bf16.xpose.msra.mxu1 %v450_v45  ;;  %1658 = vmatprep.mubr.msk.bf16.mxu1 %vm1930_vm0, %v1929_v0 }
 0x18b   :  { %1688 = vmatprep.subr.bf16.mxu1 %v1929_v0 }
 0x18c   :  { %v310_v47 = vpop.permute.xlu0 %309 }
 0x190   :  { %v2072_v48 = vpop.permute.xlu0 %586 }
 0x191   :  { %1659 = vmatmul.mubr.msk.bf16.vlgmr.msra.gmra.mxu1 %vm163_vm2, %v429_v29 }
 0x192   :  { %1689 = vmatpush3.bf16.xpose.msra.mxu1 %v743_v49  ;;  %1662 = vmatprep.mubr.msk.bf16.mxu1 %vm1930_vm0, %v1929_v0  ;;  %v1537_v49 = vld [vmem:[#allocation3 + $0x28] sm:$0xff]  }
 0x193   :  { %1690 = vmatprep.subr.bf16.mxu1 %v1929_v0  ;;  %v1509_v58 = vunpack.c.h.bf16 %v1537_v49 }
 0x194   :  { %v314_v51 = vpop.permute.xlu0 %313 }
 0x195   :  { %1635 = vmatpush3.bf16.msra.mxu0 %v314_v51 }
 0x196   :  { %1636 = vmatprep.subr.bf16.mxu0 %v1929_v0 }
 0x199   :  { %1637 = vmatpush3.bf16.msra.mxu0 %v312_v52  ;;  %1663 = vmatmul.mubr.msk.bf16.gmra.mxu1 %vm163_vm2, %v431_v31 }
 0x19a   :  { %1691 = vmatpush3.bf16.xpose.msra.mxu1 %v740_v53  ;;  %1638 = vmatprep.subr.bf16.mxu0 %v1929_v0  ;;  %v1508_v53 = vunpack.c.l.bf16 %v1537_v49 }
 0x19b   :  { %1666 = vmatprep.mubr.msk.bf16.mxu1 %vm1930_vm0, %v1929_v0  ;;  %1692 = vmatprep.subr.bf16.mxu1 %v1929_v0 }
 0x19d   :  { %1639 = vmatpush3.bf16.msra.mxu0 %v310_v47 }
 0x19e   :  { %1670 = vmatprep.subr.bf16.mxu0 %v1929_v0 }
 0x1a1   :  { %1667 = vmatmul.mubr.msk.bf16.gmra.mxu1 %vm163_vm2, %v433_v34 }
 0x1a2   :  { %1693 = vmatpush3.bf16.xpose.msra.mxu1 %v737_v54  ;;  %1694 = vmatprep.mubr.msk.bf16.mxu1 %vm1930_vm0, %v1929_v0 }
 0x1a3   :  { %1724 = vmatprep.subr.bf16.mxu1 %v1929_v0 }
 0x1a9   :  { %1695 = vmatmul.mubr.msk.bf16.vlgmr.msra.gmra.mxu1 %vm163_vm2, %v716_v35  ;;  %v1501_v35 = vunpack.c.h.bf16 %v1499_v26 }
 0x1aa   :  { %1725 = vmatpush3.bf16.xpose.msra.mxu1 %v1030_v55  ;;  %1698 = vmatprep.mubr.msk.bf16.mxu1 %vm1930_vm0, %v1929_v0 }
 0x1ab   :  { %1726 = vmatprep.subr.bf16.mxu1 %v1929_v0 }
 0x1b1   :  { %1699 = vmatmul.mubr.msk.bf16.gmra.mxu1 %vm163_vm2, %v718_v38 }
 0x1b2   :  { %1727 = vmatpush3.bf16.xpose.msra.mxu1 %v1027_v56  ;;  %1702 = vmatprep.mubr.msk.bf16.mxu1 %vm1930_vm0, %v1929_v0 }
 0x1b3   :  { %1728 = vmatprep.subr.bf16.mxu1 %v1929_v0 }
 0x1b9   :  { %1703 = vmatmul.mubr.msk.bf16.gmra.mxu1 %vm163_vm2, %v720_v40 }
 0x1ba   :  { %1729 = vmatpush3.bf16.xpose.msra.mxu1 %v1024_v57  ;;  %1730 = vmatprep.mubr.msk.bf16.mxu1 %vm1930_vm0, %v1929_v0 }
 0x1bb   :  { %1776 = vmatprep.subr.bf16.mxu1 %v1929_v0 }
 0x1c1   :  { %1731 = vmatmul.mubr.msk.bf16.vlgmr.msra.gmra.mxu1 %vm163_vm2, %v1003_v42 }
 0x1c2   :  { %1734 = vmatprep.mubr.msk.bf16.mxu1 %vm1930_vm0, %v1929_v0 }
 0x1c9   :  { %1735 = vmatmul.mubr.msk.bf16.gmra.mxu1 %vm163_vm2, %v1005_v50 }
 0x1ca   :  { %1738 = vmatprep.mubr.msk.bf16.mxu1 %vm1930_vm0, %v1929_v0 }
 0x1d1   :  { %1739 = vmatmul.mubr.msk.bf16.gmra.mxu1 %vm163_vm2, %v1007_v44 }
 0x1d2   :  { %1768 = vmatprep.mubr.msk.bf16.mxu1 %vm1930_vm0, %v1929_v0 }
 0x239   :  { %v216_v60 = vpop.f32.mrf.mxu1 }
 0x23a   :  { %v2116_v61 = vadd.f32 %v1488_v59, %v216_v60  ;;  %v1511_v60 = vld [vmem:[#allocation3 + $0x30] sm:$0xff]  }
 0x23b   :  { %v1624_v63 = vpop.f32.mrf.mxu1 }
 0x23c   :  { %v240_v2 = vsel %vm239_vm3, %v2116_v61, -inf }
 0x23d   :  { %241 = vmax.xlane.f32.xlu1 %v240_v2  ;;  %v219_v3 = vpop.f32.mrf.mxu1  ;;  %v1512_v2 = vunpack.c.l.bf16 %v1511_v60 }
 0x23e   :  { %v2120_v4 = vadd.f32 %v1489_v62, %v219_v3 }
 0x23f   :  { %v1625_v6 = vpop.f32.mrf.mxu1 }
 0x240   :  { %v243_v7 = vsel %vm239_vm3, %v2120_v4, -inf }
 0x241   :  { %244 = vmax.xlane.f32.xlu0 %v243_v7  ;;  %v224_v8 = vpop.f32.mrf.mxu1 }
 0x242   :  { %v2124_v10 = vadd.f32 %v1492_v5, %v224_v8 }
 0x243   :  { %v1628_v12 = vpop.f32.mrf.mxu1 }
 0x244   :  { %v246_v14 = vsel %vm239_vm3, %v2124_v10, -inf }
 0x245   :  { %247 = vmax.xlane.f32.xlu0 %v246_v14  ;;  %v227_v15 = vpop.f32.mrf.mxu1 }
 0x246   :  { %v2128_v16 = vadd.f32 %v1493_v11, %v227_v15 }
 0x247   :  { %v1629_v19 = vpop.f32.mrf.mxu1 }
 0x248   :  { %v249_v21 = vsel %vm239_vm3, %v2128_v16, -inf }
 0x249   :  { %250 = vmax.xlane.f32.xlu1 %v249_v21  ;;  %v232_v22 = vpop.f32.mrf.mxu1 }
 0x24a   :  { %v2132_v23 = vadd.f32 %v1496_v17, %v232_v22 }
 0x24b   :  { %v1632_v25 = vpop.f32.mrf.mxu1 }
 0x24c   :  { %v252_v27 = vsel %vm239_vm3, %v2132_v23, -inf }
 0x24d   :  { %253 = vmax.xlane.f32.xlu0 %v252_v27  ;;  %v235_v28 = vpop.f32.mrf.mxu1 }
 0x24e   :  { %v2136_v29 = vadd.f32 %v1497_v24, %v235_v28 }
 0x24f   :  { %v1633_v31 = vpop.f32.mrf.mxu1 }
 0x250   :  { %v255_v32 = vsel %vm239_vm3, %v2136_v29, -inf }
 0x251   :  { %256 = vmax.xlane.f32.xlu1 %v255_v32  ;;  %v492_v33 = vpop.f32.mrf.mxu1 }
 0x252   :  { %v2140_v34 = vadd.f32 %v1500_v30, %v492_v33 }
 0x253   :  { %v1660_v36 = vpop.f32.mrf.mxu1 }
 0x254   :  { %v515_v38 = vsel %vm239_vm3, %v2140_v34, -inf }
 0x255   :  { %516 = vmax.xlane.f32.xlu0 %v515_v38  ;;  %v495_v39 = vpop.f32.mrf.mxu1 }
 0x256   :  { %v2144_v40 = vadd.f32 %v1501_v35, %v495_v39  ;;  %v1538_v39 = vld [vmem:[#allocation3 + $0x38] sm:$0xff]  }
 0x257   :  { %v1661_v42 = vpop.f32.mrf.mxu1  ;;  %v1517_v49 = vunpack.c.h.bf16 %v1538_v39 }
 0x258   :  { %v518_v43 = vsel %vm239_vm3, %v2144_v40, -inf  ;;  %v1513_v42 = vunpack.c.h.bf16 %v1511_v60 }
 0x259   :  { %519 = vmax.xlane.f32.xlu1 %v518_v43  ;;  %v500_v44 = vpop.f32.mrf.mxu1  ;;  %v1516_v43 = vunpack.c.l.bf16 %v1538_v39 }
 0x25a   :  { %v2148_v45 = vadd.f32 %v1504_v41, %v500_v44  ;;  %v1539_v44 = vld [vmem:[#allocation3 + $0x40] sm:$0xff]  }
 0x25b   :  { %v1664_v47 = vpop.f32.mrf.mxu1 }
 0x25c   :  { %v521_v50 = vsel %vm239_vm3, %v2148_v45, -inf }
 0x25d   :  { %522 = vmax.xlane.f32.xlu0 %v521_v50  ;;  %v503_v51 = vpop.f32.mrf.mxu1  ;;  %v1520_v50 = vunpack.c.l.bf16 %v1539_v44 }
 0x25e   :  { %v2152_v52 = vadd.f32 %v1505_v46, %v503_v51  ;;  %v1523_v51 = vld [vmem:[#allocation3 + $0x48] sm:$0xff]  }
 0x25f   :  { %v1665_v54 = vpop.f32.mrf.mxu1 }
 0x260   :  { %v524_v55 = vsel %vm239_vm3, %v2152_v52, -inf  ;;  %v1524_v54 = vunpack.c.l.bf16 %v1523_v51 }
 0x261   :  { %525 = vmax.xlane.f32.xlu1 %v524_v55  ;;  %v508_v56 = vpop.f32.mrf.mxu1 }
 0x262   :  { %v2156_v57 = vadd.f32 %v1508_v53, %v508_v56  ;;  %v1521_v53 = vunpack.c.h.bf16 %v1539_v44 }
 0x263   :  { %v1668_v59 = vpop.f32.mrf.mxu1 }
 0x264   :  { %v527_v62 = vsel %vm239_vm3, %v2156_v57, -inf }
 0x265   :  { %528 = vmax.xlane.f32.xlu0 %v527_v62  ;;  %v511_v63 = vpop.f32.mrf.mxu1  ;;  %v1525_v62 = vunpack.c.h.bf16 %v1523_v51 }
 0x266   :  { %v2160_v1 = vadd.f32 %v1509_v58, %v511_v63  ;;  %v1540_v58 = vld [vmem:[#allocation3 + $0x50] sm:$0xff]  }
 0x267   :  { %v1669_v3 = vpop.f32.mrf.mxu1  ;;  %v1528_v63 = vunpack.c.l.bf16 %v1540_v58 }
 0x268   :  { %v530_v5 = vsel %vm239_vm3, %v2160_v1, -inf }
 0x269   :  { %531 = vmax.xlane.f32.xlu1 %v530_v5  ;;  %v779_v6 = vpop.f32.mrf.mxu1  ;;  %v1541_v5 = vld [vmem:[#allocation3 + $0x58] sm:$0xff]  }
 0x26a   :  { %v2164_v7 = vadd.f32 %v1512_v2, %v779_v6 }
 0x26b   :  { %v1696_v8 = vpop.f32.mrf.mxu1 }
 0x26c   :  { %v802_v11 = vsel %vm239_vm3, %v2164_v7, -inf }
 0x26d   :  { %803 = vmax.xlane.f32.xlu0 %v802_v11  ;;  %v782_v12 = vpop.f32.mrf.mxu1  ;;  %v1529_v11 = vunpack.c.h.bf16 %v1540_v58 }
 0x26e   :  { %v2174_v46 = vadd.f32 %v1513_v42, %v782_v12  ;;  %v1532_v12 = vunpack.c.l.bf16 %v1541_v5 }
 0x26f   :  { %v1697_v13 = vpop.f32.mrf.mxu1 }
 0x270   :  { %v805_v59 = vsel %vm239_vm3, %v2174_v46, -inf }
 0x271   :  { %v787_v14 = vpop.f32.mrf.mxu1 }
 0x272   :  { %v2176_v47 = vadd.f32 %v1516_v43, %v787_v14 }
 0x273   :  { %v1700_v15 = vpop.f32.mrf.mxu1 }
 0x274   :  { %v808_v60 = vsel %vm239_vm3, %v2176_v47, -inf }
 0x275   :  { %v790_v17 = vpop.f32.mrf.mxu1 }
 0x276   :  { %v2178_v55 = vadd.f32 %v1517_v49, %v790_v17 }
 0x277   :  { %v1701_v19 = vpop.f32.mrf.mxu1 }
 0x278   :  { %v811_v6 = vsel %vm239_vm3, %v2178_v55, -inf  ;;  %v1533_v19 = vunpack.c.h.bf16 %v1541_v5 }
 0x279   :  { %v795_v21 = vpop.f32.mrf.mxu1 }
 0x27a   :  { %875 = vrot.lane.b32.xlu1 %v2014_v18, %s1939_s15  ;;  %v2180_v56 = vadd.f32 %v1520_v50, %v795_v21 }
 0x27b   :  { %v1704_v22 = vpop.f32.mrf.mxu1 }
 0x27c   :  { %v814_v8 = vsel %vm239_vm3, %v2180_v56, -inf }
 0x27d   :  { %v798_v24 = vpop.f32.mrf.mxu1 }
 0x27e   :  { %873 = vrot.lane.b32.xlu1 %v2018_v20, %s1939_s15  ;;  %v2186_v2 = vadd.f32 %v1521_v53, %v798_v24 }
 0x27f   :  { %v1705_v25 = vpop.f32.mrf.mxu1 }
 0x280   :  { %v817_v15 = vsel %vm239_vm3, %v2186_v2, -inf }
 0x281   :  { %v1066_v26 = vpop.f32.mrf.mxu1 }
 0x282   :  { %v2188_v3 = vadd.f32 %v1524_v54, %v1066_v26 }
 0x283   :  { %584 = vrot.lane.b32.xlu0 %v2011_v9, %s1938_s14  ;;  %v1732_v27 = vpop.f32.mrf.mxu1 }
 0x284   :  { %v1089_v17 = vsel %vm239_vm3, %v2188_v3, -inf }
 0x285   :  { %v1069_v28 = vpop.f32.mrf.mxu1 }
 0x286   :  { %v2194_v13 = vadd.f32 %v1525_v62, %v1069_v28 }
 0x287   :  { %v1733_v30 = vpop.f32.mrf.mxu1 }
 0x288   :  { %v1092_v24 = vsel %vm239_vm3, %v2194_v13, -inf }
 0x289   :  { %v1074_v31 = vpop.f32.mrf.mxu1 }
 0x28a   :  { %v2196_v14 = vadd.f32 %v1528_v63, %v1074_v31  ;;  %v2218_v31 = vpop.permute.xlu1 %588 }
 0x28b   :  { %v1736_v32 = vpop.f32.mrf.mxu1 }
 0x28c   :  { %v1095_v25 = vsel %vm239_vm3, %v2196_v14, -inf }
 0x28d   :  { %v1077_v33 = vpop.f32.mrf.mxu1 }
 0x28e   :  { %v2202_v21 = vadd.f32 %v1529_v11, %v1077_v33 }
 0x28f   :  { %v1737_v35 = vpop.f32.mrf.mxu1 }
 0x290   :  { %v1098_v27 = vsel %vm239_vm3, %v2202_v21, -inf }
 0x291   :  { %v1082_v36 = vpop.f32.mrf.mxu1 }
 0x292   :  { %v2204_v22 = vadd.f32 %v1532_v12, %v1082_v36 }
 0x293   :  { %v1740_v37 = vpop.f32.mrf.mxu1 }
 0x294   :  { %v1101_v28 = vsel %vm239_vm3, %v2204_v22, -inf }
 0x295   :  { %v1085_v38 = vpop.f32.mrf.mxu1 }
 0x296   :  { %v2210_v26 = vadd.f32 %v1533_v19, %v1085_v38 }
 0x297   :  { %v1741_v41 = vpop.f32.mrf.mxu1 }
 0x298   :  { %v1104_v30 = vsel %vm239_vm3, %v2210_v26, -inf }
 0x2a2   :  { %806 = vmax.xlane.f32.xlu1 %v805_v59  ;;  %809 = vmax.xlane.f32.xlu0 %v808_v60 }
 0x2a6   :  { %812 = vmax.xlane.f32.xlu1 %v811_v6  ;;  %815 = vmax.xlane.f32.xlu0 %v814_v8 }
 0x2aa   :  { %818 = vmax.xlane.f32.xlu1 %v817_v15  ;;  %1090 = vmax.xlane.f32.xlu0 %v1089_v17 }
 0x2ae   :  { %1093 = vmax.xlane.f32.xlu1 %v1092_v24  ;;  %1096 = vmax.xlane.f32.xlu0 %v1095_v25 }
 0x2b2   :  { %1099 = vmax.xlane.f32.xlu1 %v1098_v27  ;;  %1102 = vmax.xlane.f32.xlu0 %v1101_v28 }
 0x2b6   :  { %1105 = vmax.xlane.f32.xlu1 %v1104_v30 }
 0x2c6   :  { %v242_v32 = vpop.xlane.xlu1 %241 }
 0x2c7   :  { %v258_v33 = vsub.f32 %v2116_v61, %v242_v32 }
 0x2c9   :  { %v264_v35 = vmul.f32 1.442695, %v258_v33 }
 0x2ca   :  { %v245_v36 = vpop.xlane.xlu0 %244 }
 0x2cb   :  { %1808 = vpow2.f32 %v264_v35  ;;  %v259_v37 = vsub.f32 %v2120_v4, %v245_v36 }
 0x2cd   :  { %v266_v38 = vmul.f32 1.442695, %v259_v37 }
 0x2ce   :  { %v248_v39 = vpop.xlane.xlu0 %247 }
 0x2cf   :  { %1810 = vpow2.f32 %v266_v38  ;;  %v260_v41 = vsub.f32 %v2124_v10, %v248_v39 }
 0x2d1   :  { %v268_v42 = vmul.f32 1.442695, %v260_v41 }
 0x2d2   :  { %v251_v43 = vpop.xlane.xlu1 %250 }
 0x2d3   :  { %1812 = vpow2.f32 %v268_v42  ;;  %v261_v44 = vsub.f32 %v2128_v16, %v251_v43 }
 0x2d5   :  { %v270_v49 = vmul.f32 1.442695, %v261_v44 }
 0x2d6   :  { %v254_v50 = vpop.xlane.xlu0 %253 }
 0x2d7   :  { %1814 = vpow2.f32 %v270_v49  ;;  %v262_v61 = vsub.f32 %v2132_v23, %v254_v50 }
 0x2d8   :  { %v2225_v51 = vpop.eup %1808 }
 0x2d9   :  { %v272_v53 = vmul.f32 1.442695, %v262_v61  ;;  %v276_v4 = vsel %vm239_vm3, %v2225_v51, 0.0 }
 0x2da   :  { %v257_v54 = vpop.xlane.xlu1 %256  ;;  %277 = vadd.xlane.f32.xlu0 %v276_v4 }
 0x2db   :  { %1816 = vpow2.f32 %v272_v53  ;;  %v263_v10 = vsub.f32 %v2136_v29, %v257_v54 }
 0x2dc   :  { %v2230_v58 = vpop.eup %1810 }
 0x2dd   :  { %v274_v59 = vmul.f32 1.442695, %v263_v10  ;;  %v279_v16 = vsel %vm239_vm3, %v2230_v58, 0.0 }
 0x2de   :  { %280 = vadd.xlane.f32.xlu1 %v279_v16  ;;  %v517_v60 = vpop.xlane.xlu0 %516 }
 0x2df   :  { %1818 = vpow2.f32 %v274_v59  ;;  %v533_v23 = vsub.f32 %v2140_v34, %v517_v60 }
 0x2e0   :  { %v2235_v62 = vpop.eup %1812 }
 0x2e1   :  { %v539_v63 = vmul.f32 1.442695, %v533_v23  ;;  %v282_v5 = vsel %vm239_vm3, %v2235_v62, 0.0 }
 0x2e2   :  { %v520_v6 = vpop.xlane.xlu1 %519  ;;  %283 = vadd.xlane.f32.xlu0 %v282_v5 }
 0x2e3   :  { %1820 = vpow2.f32 %v539_v63  ;;  %v534_v29 = vsub.f32 %v2144_v40, %v520_v6 }
 0x2e4   :  { %v2240_v8 = vpop.eup %1814 }
 0x2e5   :  { %v541_v11 = vmul.f32 1.442695, %v534_v29  ;;  %v285_v12 = vsel %vm239_vm3, %v2240_v8, 0.0 }
 0x2e6   :  { %286 = vadd.xlane.f32.xlu1 %v285_v12  ;;  %v523_v15 = vpop.xlane.xlu0 %522 }
 0x2e7   :  { %1822 = vpow2.f32 %v541_v11  ;;  %v535_v34 = vsub.f32 %v2148_v45, %v523_v15 }
 0x2e8   :  { %v2245_v17 = vpop.eup %1816 }
 0x2e9   :  { %v543_v19 = vmul.f32 1.442695, %v535_v34  ;;  %v288_v24 = vsel %vm239_vm3, %v2245_v17, 0.0 }
 0x2ea   :  { %v526_v25 = vpop.xlane.xlu1 %525  ;;  %289 = vadd.xlane.f32.xlu0 %v288_v24 }
 0x2eb   :  { %1824 = vpow2.f32 %v543_v19  ;;  %v536_v40 = vsub.f32 %v2152_v52, %v526_v25 }
 0x2ec   :  { %v2250_v27 = vpop.eup %1818 }
 0x2ed   :  { %v545_v28 = vmul.f32 1.442695, %v536_v40  ;;  %v291_v30 = vsel %vm239_vm3, %v2250_v27, 0.0 }
 0x2ee   :  { %292 = vadd.xlane.f32.xlu1 %v291_v30  ;;  %v529_v32 = vpop.xlane.xlu0 %528 }
 0x2ef   :  { %1826 = vpow2.f32 %v545_v28  ;;  %v537_v45 = vsub.f32 %v2156_v57, %v529_v32 }
 0x2f0   :  { %v2255_v33 = vpop.eup %1820 }
 0x2f1   :  { %v547_v35 = vmul.f32 1.442695, %v537_v45  ;;  %v551_v36 = vsel %vm239_vm3, %v2255_v33, 0.0 }
 0x2f2   :  { %v532_v37 = vpop.xlane.xlu1 %531  ;;  %552 = vadd.xlane.f32.xlu1 %v551_v36 }
 0x2f3   :  { %1828 = vpow2.f32 %v547_v35  ;;  %v538_v52 = vsub.f32 %v2160_v1, %v532_v37 }
 0x2f4   :  { %v2260_v38 = vpop.eup %1822 }
 0x2f5   :  { %v549_v39 = vmul.f32 1.442695, %v538_v52  ;;  %v554_v41 = vsel %vm239_vm3, %v2260_v38, 0.0 }
 0x2f6   :  { %555 = vadd.xlane.f32.xlu0 %v554_v41  ;;  %v804_v42 = vpop.xlane.xlu0 %803  ;;  %v2289_v59 = vpop.permute.xlu1 %875 }
 0x2f7   :  { %1830 = vpow2.f32 %v549_v39  ;;  %v820_v57 = vsub.f32 %v2164_v7, %v804_v42 }
 0x2f8   :  { %v2265_v43 = vpop.eup %1824 }
 0x2f9   :  { %v826_v44 = vmul.f32 1.442695, %v820_v57  ;;  %v557_v49 = vsel %vm239_vm3, %v2265_v43, 0.0 }
 0x2fa   :  { %558 = vadd.xlane.f32.xlu1 %v557_v49  ;;  %v2291_v16 = vpop.permute.xlu1 %873  ;;  %v2293_v60 = vpop.permute.xlu0 %584 }
 0x2fb   :  { %1832 = vpow2.f32 %v826_v44 }
 0x2fc   :  { %v2269_v1 = vpop.eup %1826 }
 0x2fd   :  { %v560_v50 = vsel %vm239_vm3, %v2269_v1, 0.0 }
 0x2fe   :  { %561 = vadd.xlane.f32.xlu1 %v560_v50 }
 0x300   :  { %v2273_v61 = vpop.eup %1828 }
 0x301   :  { %v563_v53 = vsel %vm239_vm3, %v2273_v61, 0.0 }
 0x302   :  { %564 = vadd.xlane.f32.xlu1 %v563_v53 }
 0x304   :  { %v2277_v7 = vpop.eup %1830 }
 0x305   :  { %v566_v4 = vsel %vm239_vm3, %v2277_v7, 0.0 }
 0x306   :  { %567 = vadd.xlane.f32.xlu1 %v566_v4 }
 0x308   :  { %v2281_v54 = vpop.eup %1832 }
 0x309   :  { %v838_v10 = vsel %vm239_vm3, %v2281_v54, 0.0 }
 0x30a   :  { %839 = vadd.xlane.f32.xlu0 %v838_v10 }
 0x317   :  { %1162 = vrot.lane.b32.xlu1 %v2014_v18, %s1940_s16 }
 0x320   :  { %871 = vrot.lane.b32.xlu0 %v2011_v9, %s1939_s15 }
 0x32b   :  { %v807_v23 = vpop.xlane.xlu1 %806  ;;  %v810_v63 = vpop.xlane.xlu0 %809 }
 0x32c   :  { %v821_v5 = vsub.f32 %v2174_v46, %v807_v23  ;;  %v822_v6 = vsub.f32 %v2176_v47, %v810_v63 }
 0x32e   :  { %v828_v29 = vmul.f32 1.442695, %v821_v5  ;;  %v830_v11 = vmul.f32 1.442695, %v822_v6 }
 0x32f   :  { %v813_v12 = vpop.xlane.xlu1 %812  ;;  %v816_v15 = vpop.xlane.xlu0 %815 }
 0x330   :  { %1834 = vpow2.f32 %v828_v29  ;;  %v823_v18 = vsub.f32 %v2178_v55, %v813_v12  ;;  %v824_v19 = vsub.f32 %v2180_v56, %v816_v15 }
 0x331   :  { %1836 = vpow2.f32 %v830_v11 }
 0x332   :  { %v832_v34 = vmul.f32 1.442695, %v823_v18  ;;  %v834_v46 = vmul.f32 1.442695, %v824_v19 }
 0x333   :  { %v819_v24 = vpop.xlane.xlu1 %818  ;;  %v1091_v25 = vpop.xlane.xlu0 %1090 }
 0x334   :  { %v825_v40 = vsub.f32 %v2186_v2, %v819_v24  ;;  %v1107_v28 = vsub.f32 %v2188_v3, %v1091_v25  ;;  %1838 = vpow2.f32 %v832_v34 }
 0x336   :  { %v836_v47 = vmul.f32 1.442695, %v825_v40  ;;  %v1113_v35 = vmul.f32 1.442695, %v1107_v28 }
 0x337   :  { %v1094_v30 = vpop.xlane.xlu1 %1093  ;;  %v1097_v32 = vpop.xlane.xlu0 %1096 }
 0x338   :  { %1840 = vpow2.f32 %v836_v47  ;;  %v1108_v45 = vsub.f32 %v2194_v13, %v1094_v30  ;;  %v1109_v55 = vsub.f32 %v2196_v14, %v1097_v32 }
 0x339   :  { %1842 = vpow2.f32 %v834_v46 }
 0x33a   :  { %v1115_v36 = vmul.f32 1.442695, %v1108_v45  ;;  %v1117_v56 = vmul.f32 1.442695, %v1109_v55 }
 0x33b   :  { %v1100_v37 = vpop.xlane.xlu1 %1099  ;;  %v1103_v52 = vpop.xlane.xlu0 %1102 }
 0x33c   :  { %1844 = vpow2.f32 %v1115_v36  ;;  %v1110_v2 = vsub.f32 %v2202_v21, %v1100_v37  ;;  %v1111_v41 = vsub.f32 %v2204_v22, %v1103_v52 }
 0x33d   :  { %v2304_v3 = vpop.eup %1834  ;;  %1846 = vpow2.f32 %v1113_v35 }
 0x33e   :  { %1848 = vpow2.f32 %v1117_v56  ;;  %v1119_v39 = vmul.f32 1.442695, %v1110_v2  ;;  %v841_v13 = vsel %vm239_vm3, %v2304_v3, 0.0  ;;  %v2309_v14 = vpop.eup %1836  ;;  %v1121_v57 = vmul.f32 1.442695, %v1111_v41 }
 0x33f   :  { %v1106_v42 = vpop.xlane.xlu1 %1105  ;;  %842 = vadd.xlane.f32.xlu1 %v841_v13  ;;  %v844_v21 = vsel %vm239_vm3, %v2309_v14, 0.0 }
 0x340   :  { %1850 = vpow2.f32 %v1119_v39  ;;  %v1112_v44 = vsub.f32 %v2210_v26, %v1106_v42 }
 0x341   :  { %v2314_v49 = vpop.eup %1838  ;;  %1852 = vpow2.f32 %v1121_v57 }
 0x342   :  { %v1123_v22 = vmul.f32 1.442695, %v1112_v44  ;;  %v847_v4 = vsel %vm239_vm3, %v2314_v49, 0.0 }
 0x343   :  { %845 = vadd.xlane.f32.xlu1 %v844_v21 }
 0x344   :  { %1854 = vpow2.f32 %v1123_v22 }
 0x345   :  { %v2316_v50 = vpop.eup %1840 }
 0x346   :  { %v853_v53 = vsel %vm239_vm3, %v2316_v50, 0.0  ;;  %v2322_v10 = vpop.eup %1842 }
 0x347   :  { %854 = vadd.xlane.f32.xlu0 %v853_v53  ;;  %848 = vadd.xlane.f32.xlu1 %v847_v4  ;;  %v850_v5 = vsel %vm239_vm3, %v2322_v10, 0.0 }
 0x349   :  { %v2324_v26 = vpop.eup %1844 }
 0x34a   :  { %v2326_v23 = vpop.eup %1846  ;;  %v1128_v63 = vsel %vm239_vm3, %v2324_v26, 0.0 }
 0x34b   :  { %v2332_v6 = vpop.eup %1848  ;;  %1129 = vadd.xlane.f32.xlu0 %v1128_v63  ;;  %851 = vadd.xlane.f32.xlu1 %v850_v5  ;;  %v1125_v29 = vsel %vm239_vm3, %v2326_v23, 0.0 }
 0x34c   :  { %v1131_v11 = vsel %vm239_vm3, %v2332_v6, 0.0 }
 0x34d   :  { %v2338_v12 = vpop.eup %1850 }
 0x34e   :  { %v1134_v15 = vsel %vm239_vm3, %v2338_v12, 0.0  ;;  %v2342_v18 = vpop.eup %1852 }
 0x34f   :  { %1126 = vadd.xlane.f32.xlu1 %v1125_v29  ;;  %1132 = vadd.xlane.f32.xlu0 %v1131_v11  ;;  %v1137_v34 = vsel %vm239_vm3, %v2342_v18, 0.0 }
 0x351   :  { %v2346_v19 = vpop.eup %1854 }
 0x352   :  { %v1140_v24 = vsel %vm239_vm3, %v2346_v19, 0.0 }
 0x353   :  { %1135 = vadd.xlane.f32.xlu1 %v1134_v15 }
 0x357   :  { %1138 = vadd.xlane.f32.xlu1 %v1137_v34 }
 0x35b   :  { %1141 = vadd.xlane.f32.xlu1 %v1140_v24 }
 0x363   :  { %v278_v25 = vpop.xlane.xlu0 %277 }
 0x364   :  { %1856 = vrcp.f32 %v278_v25 }
 0x365   :  { %1160 = vrot.lane.b32.xlu0 %v2018_v20, %s1940_s16 }
 0x367   :  { %v281_v40 = vpop.xlane.xlu1 %280 }
 0x368   :  { %1858 = vrcp.f32 %v281_v40 }
 0x36b   :  { %v284_v28 = vpop.xlane.xlu0 %283 }
 0x36c   :  { %1158 = vrot.lane.b32.xlu1 %v2011_v9, %s1940_s16  ;;  %1860 = vrcp.f32 %v284_v28 }
 0x36f   :  { %v287_v46 = vpop.xlane.xlu1 %286 }
 0x370   :  { %1862 = vrcp.f32 %v287_v46 }
 0x371   :  { %v1857_v47 = vpop.eup %1856 }
 0x372   :  { %v300_v45 = vmul.f32 %v1857_v47, %v2225_v51 }
 0x373   :  { %v290_v30 = vpop.xlane.xlu0 %289 }
 0x374   :  { %1864 = vrcp.f32 %v290_v30 }
 0x375   :  { %v1859_v32 = vpop.eup %1858 }
 0x376   :  { %v301_v55 = vmul.f32 %v1859_v32, %v2230_v58 }
 0x377   :  { %v293_v35 = vpop.xlane.xlu1 %292 }
 0x378   :  { %v306_v20 = vpack.c.bf16 %v301_v55, %v300_v45  ;;  %1866 = vrcp.f32 %v293_v35 }
 0x379   :  { %v1861_v36 = vpop.eup %1860 }
 0x37a   :  { %1641 = vmatmul.mubr.msk.bf16.vlgmr.msra.gmra.mxu0 %vm239_vm3, %v306_v20  ;;  %v302_v51 = vmul.f32 %v1861_v36, %v2235_v62 }
 0x37b   :  { %1671 = vmatpush3.bf16.msra.mxu0 %v2218_v31  ;;  %v553_v9 = vpop.xlane.xlu1 %552  ;;  %1644 = vmatprep.mubr.msk.bf16.mxu0 %vm1930_vm0, %v1929_v0 }
 0x37c   :  { %1672 = vmatprep.subr.bf16.mxu0 %v1929_v0  ;;  %1868 = vrcp.f32 %v553_v9 }
 0x37d   :  { %v1863_v56 = vpop.eup %1862 }
 0x37e   :  { %v303_v58 = vmul.f32 %v1863_v56, %v2240_v8 }
 0x37f   :  { %1673 = vmatpush3.bf16.msra.mxu0 %v2072_v48  ;;  %v556_v37 = vpop.xlane.xlu0 %555 }
 0x380   :  { %1870 = vrcp.f32 %v556_v37  ;;  %1674 = vmatprep.subr.bf16.mxu0 %v1929_v0  ;;  %v307_v52 = vpack.c.bf16 %v303_v58, %v302_v51 }
 0x381   :  { %v1865_v31 = vpop.eup %1864 }
 0x382   :  { %1645 = vmatmul.mubr.msk.bf16.gmra.mxu0 %vm239_vm3, %v307_v52  ;;  %v304_v48 = vmul.f32 %v1865_v31, %v2245_v17 }
 0x383   :  { %1675 = vmatpush3.bf16.msra.mxu0 %v2293_v60  ;;  %v559_v2 = vpop.xlane.xlu1 %558  ;;  %1648 = vmatprep.mubr.msk.bf16.mxu0 %vm1930_vm0, %v1929_v0 }
 0x384   :  { %1706 = vmatprep.subr.bf16.mxu0 %v1929_v0  ;;  %1872 = vrcp.f32 %v559_v2 }
 0x385   :  { %v1867_v62 = vpop.eup %1866 }
 0x386   :  { %v305_v8 = vmul.f32 %v1867_v62, %v2250_v27 }
 0x387   :  { %v562_v39 = vpop.xlane.xlu1 %561 }
 0x388   :  { %1874 = vrcp.f32 %v562_v39  ;;  %v308_v41 = vpack.c.bf16 %v305_v8, %v304_v48 }
 0x389   :  { %v1869_v13 = vpop.eup %1868 }
 0x38a   :  { %1649 = vmatmul.mubr.msk.bf16.gmra.mxu0 %vm239_vm3, %v308_v41  ;;  %v575_v57 = vmul.f32 %v1869_v13, %v2255_v33 }
 0x38b   :  { %v565_v42 = vpop.xlane.xlu1 %564  ;;  %1676 = vmatprep.mubr.msk.bf16.mxu0 %vm1930_vm0, %v1929_v0 }
 0x38c   :  { %1876 = vrcp.f32 %v565_v42 }
 0x38d   :  { %v1871_v60 = vpop.eup %1870 }
 0x38e   :  { %v576_v44 = vmul.f32 %v1871_v60, %v2260_v38 }
 0x38f   :  { %v568_v21 = vpop.xlane.xlu1 %567 }
 0x390   :  { %v581_v17 = vpack.c.bf16 %v576_v44, %v575_v57  ;;  %1878 = vrcp.f32 %v568_v21 }
 0x391   :  { %v1873_v27 = vpop.eup %1872 }
 0x392   :  { %1677 = vmatmul.mubr.msk.bf16.vlgmr.msra.gmra.mxu0 %vm239_vm3, %v581_v17  ;;  %v577_v33 = vmul.f32 %v1873_v27, %v2265_v43 }
 0x393   :  { %1707 = vmatpush3.bf16.msra.mxu0 %v2289_v59  ;;  %1680 = vmatprep.mubr.msk.bf16.mxu0 %vm1930_vm0, %v1929_v0  ;;  %v840_v22 = vpop.xlane.xlu0 %839 }
 0x394   :  { %1708 = vmatprep.subr.bf16.mxu0 %v1929_v0  ;;  %1880 = vrcp.f32 %v840_v22 }
 0x395   :  { %v1875_v53 = vpop.eup %1874 }
 0x396   :  { %v578_v38 = vmul.f32 %v1875_v53, %v2269_v1 }
 0x397   :  { %1709 = vmatpush3.bf16.msra.mxu0 %v2291_v16  ;;  %v872_v63 = vpop.permute.xlu0 %871  ;;  %v1163_v16 = vpop.permute.xlu1 %1162 }
 0x398   :  { %1710 = vmatprep.subr.bf16.mxu0 %v1929_v0  ;;  %v582_v4 = vpack.c.bf16 %v578_v38, %v577_v33 }
 0x399   :  { %v1877_v59 = vpop.eup %1876 }
 0x39a   :  { %1681 = vmatmul.mubr.msk.bf16.gmra.mxu0 %vm239_vm3, %v582_v4  ;;  %v579_v43 = vmul.f32 %v1877_v59, %v2273_v61 }
 0x39b   :  { %1711 = vmatpush3.bf16.msra.mxu0 %v872_v63  ;;  %1684 = vmatprep.mubr.msk.bf16.mxu0 %vm1930_vm0, %v1929_v0 }
 0x39c   :  { %1742 = vmatprep.subr.bf16.mxu0 %v1929_v0 }
 0x39d   :  { %v1879_v5 = vpop.eup %1878 }
 0x39e   :  { %v580_v1 = vmul.f32 %v1879_v5, %v2277_v7 }
 0x3a0   :  { %v583_v29 = vpack.c.bf16 %v580_v1, %v579_v43 }
 0x3a1   :  { %v1881_v25 = vpop.eup %1880 }
 0x3a2   :  { %1685 = vmatmul.mubr.msk.bf16.gmra.mxu0 %vm239_vm3, %v583_v29  ;;  %v862_v28 = vmul.f32 %v1881_v25, %v2281_v54 }
 0x3a3   :  { %1712 = vmatprep.mubr.msk.bf16.mxu0 %vm1930_vm0, %v1929_v0 }
 0x3c8   :  { %v843_v11 = vpop.xlane.xlu1 %842 }
 0x3c9   :  { %1882 = vrcp.f32 %v843_v11 }
 0x3cc   :  { %v846_v15 = vpop.xlane.xlu1 %845 }
 0x3cd   :  { %1884 = vrcp.f32 %v846_v15 }
 0x3d0   :  { %v849_v34 = vpop.xlane.xlu1 %848  ;;  %v855_v24 = vpop.xlane.xlu0 %854 }
 0x3d1   :  { %1886 = vrcp.f32 %v849_v34 }
 0x3d4   :  { %v852_v40 = vpop.xlane.xlu1 %851  ;;  %v1130_v61 = vpop.xlane.xlu0 %1129 }
 0x3d5   :  { %1888 = vrcp.f32 %v852_v40 }
 0x3d6   :  { %v1883_v7 = vpop.eup %1882  ;;  %1890 = vrcp.f32 %v855_v24 }
 0x3d7   :  { %v863_v46 = vmul.f32 %v1883_v7, %v2304_v3 }
 0x3d8   :  { %v1127_v47 = vpop.xlane.xlu1 %1126  ;;  %v1133_v32 = vpop.xlane.xlu0 %1132 }
 0x3d9   :  { %v868_v30 = vpack.c.bf16 %v863_v46, %v862_v28  ;;  %1892 = vrcp.f32 %v1127_v47 }
 0x3da   :  { %v1885_v45 = vpop.eup %1884  ;;  %1894 = vrcp.f32 %v1130_v61 }
 0x3db   :  { %1713 = vmatmul.mubr.msk.bf16.vlgmr.msra.gmra.mxu0 %vm239_vm3, %v868_v30  ;;  %v864_v3 = vmul.f32 %v1885_v45, %v2309_v14 }
 0x3dc   :  { %1743 = vmatpush3.bf16.msra.mxu0 %v1163_v16  ;;  %v1136_v55 = vpop.xlane.xlu1 %1135  ;;  %1716 = vmatprep.mubr.msk.bf16.mxu0 %vm1930_vm0, %v1929_v0  ;;  %v1161_v54 = vpop.permute.xlu0 %1160 }
 0x3dd   :  { %1744 = vmatprep.subr.bf16.mxu0 %v1929_v0  ;;  %1896 = vrcp.f32 %v1136_v55 }
 0x3de   :  { %v1887_v35 = vpop.eup %1886  ;;  %1898 = vrcp.f32 %v1133_v32 }
 0x3df   :  { %v865_v20 = vmul.f32 %v1887_v35, %v2314_v49 }
 0x3e0   :  { %1745 = vmatpush3.bf16.msra.mxu0 %v1161_v54  ;;  %v1139_v36 = vpop.xlane.xlu1 %1138 }
 0x3e1   :  { %v869_v9 = vpack.c.bf16 %v865_v20, %v864_v3  ;;  %1746 = vmatprep.subr.bf16.mxu0 %v1929_v0 }
 0x3e2   :  { %v1889_v56 = vpop.eup %1888 }
 0x3e3   :  { %1717 = vmatmul.mubr.msk.bf16.gmra.mxu0 %vm239_vm3, %v869_v9  ;;  %v1891_v51 = vpop.eup %1890  ;;  %v866_v37 = vmul.f32 %v1889_v56, %v2322_v10 }
 0x3e4   :  { %v1142_v58 = vpop.xlane.xlu1 %1141  ;;  %1720 = vmatprep.mubr.msk.bf16.mxu0 %vm1930_vm0, %v1929_v0  ;;  %v867_v14 = vmul.f32 %v1891_v51, %v2316_v50 }
 0x3e5   :  { %1900 = vrcp.f32 %v1142_v58 }
 0x3e6   :  { %v870_v52 = vpack.c.bf16 %v867_v14, %v866_v37  ;;  %v1893_v31 = vpop.eup %1892  ;;  %1902 = vrcp.f32 %v1139_v36  ;;  %v1803_v14 = vld [vmem:[%s2482_s2 + $0x8] sm:$0xff]  }
 0x3e7   :  { %v1895_v2 = vpop.eup %1894  ;;  %v1149_v62 = vmul.f32 %v1893_v31, %v2326_v23  ;;  %1778 = vmatpush3.bf16.msra.mxu1 %v1803_v14 }
 0x3e8   :  { %v1159_v49 = vpop.permute.xlu1 %1158  ;;  %v1150_v10 = vmul.f32 %v1895_v2, %v2324_v26  ;;  %1777 = vmatprep.subr.bf16.mxu1 %v1929_v0 }
 0x3e9   :  { %1747 = vmatpush3.bf16.msra.mxu0 %v1159_v49 }
 0x3ea   :  { %1760 = vmatprep.subr.bf16.mxu0 %v1929_v0  ;;  %v1155_v48 = vpack.c.bf16 %v1150_v10, %v1149_v62  ;;  %v1897_v50 = vpop.eup %1896 }
 0x3eb   :  { %1721 = vmatmul.mubr.msk.bf16.gmra.mxu0 %vm239_vm3, %v870_v52  ;;  %v1899_v8 = vpop.eup %1898  ;;  %v1152_v39 = vmul.f32 %v1897_v50, %v2338_v12 }
 0x3ec   :  { %1748 = vmatprep.mubr.msk.bf16.mxu0 %vm1930_vm0, %v1929_v0  ;;  %v1151_v41 = vmul.f32 %v1899_v8, %v2332_v6 }
 0x3ee   :  { %v1156_v13 = vpack.c.bf16 %v1152_v39, %v1151_v41  ;;  %v1804_v39 = vld [vmem:[%s2482_s2] sm:$0xff]  }
 0x3ef   :  { %1779 = vmatpush3.bf16.msra.mxu1 %v1804_v39 }
 0x3f2   :  { %v1901_v42 = vpop.eup %1900 }
 0x3f3   :  { %1749 = vmatmul.mubr.msk.bf16.vlgmr.msra.gmra.mxu0 %vm239_vm3, %v1155_v48  ;;  %v1903_v23 = vpop.eup %1902  ;;  %v1154_v26 = vmul.f32 %v1901_v42, %v2346_v19 }
 0x3f4   :  { %1752 = vmatprep.mubr.msk.bf16.mxu0 %vm1930_vm0, %v1929_v0  ;;  %v1153_v60 = vmul.f32 %v1903_v23, %v2342_v18  ;;  %1761 = vmatpush3.bf16.msra.mxu0 %v1803_v14 }
 0x3f5   :  { %1762 = vmatprep.subr.bf16.mxu0 %v1929_v0 }
 0x3f6   :  { %v1157_v57 = vpack.c.bf16 %v1154_v26, %v1153_v60 }
 0x3f8   :  { %1763 = vmatpush3.bf16.msra.mxu0 %v1804_v39 }
 0x3fb   :  { %1753 = vmatmul.mubr.msk.bf16.gmra.mxu0 %vm239_vm3, %v1156_v13 }
 0x3fc   :  { %1756 = vmatprep.mubr.msk.bf16.mxu0 %vm1930_vm0, %v1929_v0 }
 0x403   :  { %1757 = vmatmul.mubr.msk.bf16.gmra.mxu0 %vm239_vm3, %v1157_v57 }
 0x404   :  { %1764 = vmatprep.mubr.msk.bf16.mxu0 %vm1930_vm0, %v1929_v0 }
 0x43a   :  { %v361_v12 = vpop.f32.mrf.mxu0 }
 0x43b   :  { %v1462_v6 = vpack.c.bf16 %v361_v12, %v361_v12 }
 0x43c   :  { %v1642_v44 = vpop.f32.mrf.mxu0 }
 0x43d   :  { %409 = vst.msk [vmem:[#allocation2] sm:$0xf] %vm408_vm4, %v1462_v6 }
 0x43e   :  { %v364_v21 = vpop.f32.mrf.mxu0 }
 0x43f   :  { %v1463_v17 = vpack.c.bf16 %v364_v21, %v364_v21 }
 0x440   :  { %v1643_v27 = vpop.f32.mrf.mxu0 }
 0x441   :  { %410 = vst.msk [vmem:[#allocation2 + $0x4] sm:$0xf] %vm408_vm4, %v1463_v17 }
 0x442   :  { %v369_v19 = vpop.f32.mrf.mxu0 }
 0x443   :  { %v1464_v22 = vpack.c.bf16 %v369_v19, %v369_v19 }
 0x444   :  { %v1646_v18 = vpop.f32.mrf.mxu0 }
 0x445   :  { %411 = vst.msk [vmem:[#allocation2 + $0x8] sm:$0xf] %vm408_vm4, %v1464_v22 }
 0x446   :  { %v372_v53 = vpop.f32.mrf.mxu0 }
 0x447   :  { %v1465_v33 = vpack.c.bf16 %v372_v53, %v372_v53 }
 0x448   :  { %v1647_v38 = vpop.f32.mrf.mxu0 }
 0x449   :  { %412 = vst.msk [vmem:[#allocation2 + $0xc] sm:$0xf] %vm408_vm4, %v1465_v33 }
 0x44a   :  { %v377_v4 = vpop.f32.mrf.mxu0 }
 0x44b   :  { %v1466_v63 = vpack.c.bf16 %v377_v4, %v377_v4 }
 0x44c   :  { %v1650_v59 = vpop.f32.mrf.mxu0 }
 0x44d   :  { %413 = vst.msk [vmem:[#allocation2 + $0x10] sm:$0xf] %vm408_vm4, %v1466_v63 }
 0x44e   :  { %v380_v5 = vpop.f32.mrf.mxu0 }
 0x44f   :  { %v1467_v43 = vpack.c.bf16 %v380_v5, %v380_v5 }
 0x450   :  { %v1651_v1 = vpop.f32.mrf.mxu0 }
 0x451   :  { %414 = vst.msk [vmem:[#allocation2 + $0x14] sm:$0xf] %vm408_vm4, %v1467_v43 }
 0x452   :  { %v636_v29 = vpop.f32.mrf.mxu0 }
 0x453   :  { %v1468_v16 = vpack.c.bf16 %v636_v29, %v636_v29 }
 0x454   :  { %v1678_v11 = vpop.f32.mrf.mxu0 }
 0x455   :  { %677 = vrot.lane.b32.xlu1 %v1468_v16, %s1941_s17 }
 0x456   :  { %v639_v15 = vpop.f32.mrf.mxu0 }
 0x457   :  { %v1469_v34 = vpack.c.bf16 %v639_v15, %v639_v15 }
 0x458   :  { %v1679_v24 = vpop.f32.mrf.mxu0 }
 0x459   :  { %679 = vrot.lane.b32.xlu0 %v1469_v34, %s1941_s17 }
 0x45a   :  { %v644_v25 = vpop.f32.mrf.mxu0 }
 0x45b   :  { %v1470_v40 = vpack.c.bf16 %v644_v25, %v644_v25 }
 0x45c   :  { %v1682_v61 = vpop.f32.mrf.mxu0 }
 0x45d   :  { %681 = vrot.lane.b32.xlu1 %v1470_v40, %s1941_s17 }
 0x45e   :  { %v647_v7 = vpop.f32.mrf.mxu0 }
 0x45f   :  { %v1471_v28 = vpack.c.bf16 %v647_v7, %v647_v7 }
 0x460   :  { %v1683_v46 = vpop.f32.mrf.mxu0 }
 0x461   :  { %683 = vrot.lane.b32.xlu1 %v1471_v28, %s1941_s17 }
 0x462   :  { %v652_v47 = vpop.f32.mrf.mxu0 }
 0x463   :  { %v1472_v30 = vpack.c.bf16 %v652_v47, %v652_v47 }
 0x464   :  { %v1686_v32 = vpop.f32.mrf.mxu0 }
 0x465   :  { %685 = vrot.lane.b32.xlu1 %v1472_v30, %s1941_s17  ;;  %v1453_v32 = vld [vmem:[%s2483_s3] ss:$0 sm:$0xff] }
 0x466   :  { %v655_v45 = vpop.f32.mrf.mxu0 }
 0x467   :  { %v1473_v55 = vpack.c.bf16 %v655_v45, %v655_v45 }
 0x468   :  { %v1687_v35 = vpop.f32.mrf.mxu0 }
 0x469   :  { %687 = vrot.lane.b32.xlu0 %v1473_v55, %s1941_s17 }
 0x49b   :  { %v923_v54 = vpop.f32.mrf.mxu0 }
 0x49c   :  { %v1474_v3 = vpack.c.bf16 %v923_v54, %v923_v54 }
 0x49d   :  { %v1714_v20 = vpop.f32.mrf.mxu0 }
 0x49e   :  { %964 = vrot.lane.b32.xlu1 %v1474_v3, %s1942_s18 }
 0x49f   :  { %v926_v36 = vpop.f32.mrf.mxu0 }
 0x4a0   :  { %v1475_v9 = vpack.c.bf16 %v926_v36, %v926_v36 }
 0x4a1   :  { %v1715_v56 = vpop.f32.mrf.mxu0 }
 0x4a2   :  { %966 = vrot.lane.b32.xlu0 %v1475_v9, %s1942_s18 }
 0x4a3   :  { %v931_v51 = vpop.f32.mrf.mxu0 }
 0x4a4   :  { %v1476_v58 = vpack.c.bf16 %v931_v51, %v931_v51 }
 0x4a5   :  { %v1718_v37 = vpop.f32.mrf.mxu0 }
 0x4a6   :  { %968 = vrot.lane.b32.xlu1 %v1476_v58, %s1942_s18 }
 0x4a7   :  { %v934_v49 = vpop.f32.mrf.mxu0 }
 0x4a8   :  { %v1477_v52 = vpack.c.bf16 %v934_v49, %v934_v49 }
 0x4a9   :  { %v1719_v31 = vpop.f32.mrf.mxu0 }
 0x4aa   :  { %970 = vrot.lane.b32.xlu1 %v1477_v52, %s1942_s18 }
 0x4ab   :  { %v939_v2 = vpop.f32.mrf.mxu0 }
 0x4ac   :  { %v1478_v62 = vpack.c.bf16 %v939_v2, %v939_v2 }
 0x4ad   :  { %v1722_v10 = vpop.f32.mrf.mxu0 }
 0x4ae   :  { %972 = vrot.lane.b32.xlu1 %v1478_v62, %s1942_s18 }
 0x4af   :  { %v942_v48 = vpop.f32.mrf.mxu0 }
 0x4b0   :  { %v1479_v50 = vpack.c.bf16 %v942_v48, %v942_v48 }
 0x4b1   :  { %v1723_v8 = vpop.f32.mrf.mxu0 }
 0x4b2   :  { %974 = vrot.lane.b32.xlu0 %v1479_v50, %s1942_s18 }
 0x4b3   :  { %v1210_v41 = vpop.f32.mrf.mxu0 }
 0x4b4   :  { %v1480_v6 = vpack.c.bf16 %v1210_v41, %v1210_v41 }
 0x4b5   :  { %v1750_v13 = vpop.f32.mrf.mxu0 }
 0x4b7   :  { %v1213_v42 = vpop.f32.mrf.mxu0 }
 0x4b8   :  { %v1481_v27 = vpack.c.bf16 %v1213_v42, %v1213_v42 }
 0x4b9   :  { %v1751_v23 = vpop.f32.mrf.mxu0 }
 0x4bb   :  { %v1218_v26 = vpop.f32.mrf.mxu0 }
 0x4bc   :  { %v1482_v60 = vpack.c.bf16 %v1218_v26, %v1218_v26 }
 0x4bd   :  { %v1754_v57 = vpop.f32.mrf.mxu0 }
 0x4be   :  { %1255 = vrot.lane.b32.xlu1 %v1482_v60, %s1943_s23 }
 0x4bf   :  { %v1221_v12 = vpop.f32.mrf.mxu0 }
 0x4c0   :  { %v1483_v44 = vpack.c.bf16 %v1221_v12, %v1221_v12 }
 0x4c1   :  { %v1755_v21 = vpop.f32.mrf.mxu0 }
 0x4c2   :  { %1251 = vrot.lane.b32.xlu1 %v1480_v6, %s1943_s23  ;;  %1257 = vrot.lane.b32.xlu0 %v1483_v44, %s1943_s23 }
 0x4c3   :  { %v1226_v17 = vpop.f32.mrf.mxu0 }
 0x4c4   :  { %v1484_v19 = vpack.c.bf16 %v1226_v17, %v1226_v17 }
 0x4c5   :  { %v1758_v22 = vpop.f32.mrf.mxu0 }
 0x4c6   :  { %1253 = vrot.lane.b32.xlu0 %v1481_v27, %s1943_s23  ;;  %1259 = vrot.lane.b32.xlu1 %v1484_v19, %s1943_s23 }
 0x4c7   :  { %v678_v18 = vpop.permute.xlu1 %677  ;;  %v1229_v53 = vpop.f32.mrf.mxu0 }
 0x4c8   :  { %696 = vst.msk [vmem:[#allocation2] sm:$0xf] %vm695_vm5, %v678_v18  ;;  %v1485_v33 = vpack.c.bf16 %v1229_v53, %v1229_v53 }
 0x4c9   :  { %v1759_v38 = vpop.f32.mrf.mxu0 }
 0x4ca   :  { %1261 = vrot.lane.b32.xlu0 %v1485_v33, %s1943_s23 }
 0x4cb   :  { %v680_v4 = vpop.permute.xlu0 %679 }
 0x4cc   :  { %697 = vst.msk [vmem:[#allocation2 + $0x4] sm:$0xf] %vm695_vm5, %v680_v4 }
 0x4cf   :  { %v682_v63 = vpop.permute.xlu1 %681 }
 0x4d0   :  { %698 = vst.msk [vmem:[#allocation2 + $0x8] sm:$0xf] %vm695_vm5, %v682_v63 }
 0x4d3   :  { %v684_v59 = vpop.permute.xlu1 %683 }
 0x4d4   :  { %699 = vst.msk [vmem:[#allocation2 + $0xc] sm:$0xf] %vm695_vm5, %v684_v59 }
 0x4d7   :  { %v686_v5 = vpop.permute.xlu1 %685 }
 0x4d8   :  { %700 = vst.msk [vmem:[#allocation2 + $0x10] sm:$0xf] %vm695_vm5, %v686_v5 }
 0x4db   :  { %v688_v43 = vpop.permute.xlu0 %687 }
 0x4dc   :  { %701 = vst.msk [vmem:[#allocation2 + $0x14] sm:$0xf] %vm695_vm5, %v688_v43 }
 0x510   :  { %v965_v1 = vpop.permute.xlu1 %964 }
 0x511   :  { %983 = vst.msk [vmem:[#allocation2] sm:$0xf] %vm982_vm6, %v965_v1 }
 0x514   :  { %v967_v29 = vpop.permute.xlu0 %966 }
 0x515   :  { %984 = vst.msk [vmem:[#allocation2 + $0x4] sm:$0xf] %vm982_vm6, %v967_v29 }
 0x518   :  { %v969_v16 = vpop.permute.xlu1 %968 }
 0x519   :  { %985 = vst.msk [vmem:[#allocation2 + $0x8] sm:$0xf] %vm982_vm6, %v969_v16 }
 0x51c   :  { %v971_v11 = vpop.permute.xlu1 %970 }
 0x51d   :  { %986 = vst.msk [vmem:[#allocation2 + $0xc] sm:$0xf] %vm982_vm6, %v971_v11 }
 0x520   :  { %v973_v15 = vpop.permute.xlu1 %972 }
 0x521   :  { %987 = vst.msk [vmem:[#allocation2 + $0x10] sm:$0xf] %vm982_vm6, %v973_v15 }
 0x524   :  { %v975_v34 = vpop.permute.xlu0 %974 }
 0x525   :  { %988 = vst.msk [vmem:[#allocation2 + $0x14] sm:$0xf] %vm982_vm6, %v975_v34 }
 0x530   :  { %v1256_v24 = vpop.permute.xlu1 %1255 }
 0x531   :  { %1272 = vst.msk [vmem:[#allocation2 + $0x8] sm:$0xf] %vm1269_vm7, %v1256_v24 }
 0x534   :  { %v1252_v25 = vpop.permute.xlu1 %1251  ;;  %v1258_v40 = vpop.permute.xlu0 %1257 }
 0x535   :  { %1270 = vst.msk [vmem:[#allocation2] sm:$0xf] %vm1269_vm7, %v1252_v25  ;;  %1273 = vst.msk [vmem:[#allocation2 + $0xc] sm:$0xf] %vm1269_vm7, %v1258_v40 }
 0x538   :  { %v1254_v61 = vpop.permute.xlu0 %1253  ;;  %v1260_v7 = vpop.permute.xlu1 %1259 }
 0x539   :  { %1271 = vst.msk [vmem:[#allocation2 + $0x4] sm:$0xf] %vm1269_vm7, %v1254_v61  ;;  %1274 = vst.msk [vmem:[#allocation2 + $0x10] sm:$0xf] %vm1269_vm7, %v1260_v7 }
 0x53c   :  { %v1262_v28 = vpop.permute.xlu0 %1261  ;;  %v1805_v46 = vld [vmem:[#allocation2 + $0x8] sm:$0xff]  }
 0x53d   :  { %1275 = vst.msk [vmem:[#allocation2 + $0x14] sm:$0xf] %vm1269_vm7, %v1262_v28  ;;  %1769 = vmatmul.mubr.msk.bf16.vlgmr.msra.gmra.mxu1 %vm72_vm1, %v1805_v46 }
 0x53e   :  { %1772 = vmatprep.mubr.msk.bf16.mxu1 %vm1930_vm0, %v1929_v0 }
 0x540   :  { %v1806_v47 = vld [vmem:[#allocation2] sm:$0xff]  }
 0x541   :  { %1765 = vmatmul.mubr.msk.bf16.vlgmr.msra.gmra.mxu0 %vm72_vm1, %v1806_v47 }
 0x544   :  { %v1807_v30 = vld [vmem:[#allocation2 + $0x10] sm:$0xff]  }
 0x545   :  { %1773 = vmatmul.mubr.msk.bf16.gmra.mxu1 %vm72_vm1, %v1807_v30 }
 0x5fd   :  { %v1371_v45 = vpop.f32.mrf.mxu1 }
 0x5fe   :  { %v1372_v55 = vadd.f32 %v1453_v32, %v1371_v45 }
 0x5ff   :  { %v1770_v35 = vpop.f32.mrf.mxu1 }
 0x600   :  { %1388 = vst.msk [vmem:[%s2485_s5 + $0x10] sm:$0xff] %vm72_vm1, %v1372_v55 }
 0x601   :  { %v1363_v54 = vpop.f32.mrf.mxu0  ;;  %v1374_v0 = vpop.f32.mrf.mxu1 }
 0x602   :  { %v1364_v3 = vadd.f32 %v1453_v32, %v1363_v54  ;;  %v1375_v20 = vadd.f32 %v1453_v32, %v1374_v0 }
 0x603   :  { %v1766_v36 = vpop.f32.mrf.mxu0  ;;  %v1771_v9 = vpop.f32.mrf.mxu1 }
 0x604   :  { %1386 = vst.msk [vmem:[%s2485_s5] sm:$0xff] %vm72_vm1, %v1364_v3  ;;  %1389 = vst.msk [vmem:[%s2485_s5 + $0x18] sm:$0xff] %vm72_vm1, %v1375_v20 }
 0x605   :  { %v1366_v56 = vpop.f32.mrf.mxu0  ;;  %v1379_v51 = vpop.f32.mrf.mxu1 }
 0x606   :  { %v1367_v58 = vadd.f32 %v1453_v32, %v1366_v56  ;;  %v1380_v37 = vadd.f32 %v1453_v32, %v1379_v51 }
 0x607   :  { %v1767_v14 = vpop.f32.mrf.mxu0  ;;  %v1774_v49 = vpop.f32.mrf.mxu1 }
 0x608   :  { %1387 = vst.msk [vmem:[%s2485_s5 + $0x8] sm:$0xff] %vm72_vm1, %v1367_v58  ;;  %1390 = vst.msk [vmem:[%s2485_s5 + $0x20] sm:$0xff] %vm72_vm1, %v1380_v37 }
 0x609   :  { %v1382_v52 = vpop.f32.mrf.mxu1 }
 0x60a   :  { %v1383_v31 = vadd.f32 %v1453_v32, %v1382_v52 }
 0x60b   :  { %v1775_v2 = vpop.f32.mrf.mxu1 }
 0x60c   :  { %1391 = vst.msk [vmem:[%s2485_s5 + $0x28] sm:$0xff] %vm72_vm1, %v1383_v31 }
 0x60d   :  { %1396 = vsyncpa [#allocation4], 1 }

</bundles_post_ra>
